<compile_context>
chip_gen: v7x
topology: tpu7x:2x2x1
jax: 0.10.0
libtpu: 0.0.40
codegen_flags: <defaults>
</compile_context>

<pallas_src>
import math
import functools

import jax
import jax.numpy as jnp
from jax.experimental import pallas as pl
from jax.experimental.pallas import tpu as pltpu


# ----------------------------------------------------------------------------
# Tiling helper
# ----------------------------------------------------------------------------

def _choose_tile(dim, max_tile, align):
    """Largest tile <= max_tile that is align-multiple and divides dim; else full dim."""
    if dim <= max_tile:
        return dim
    t = (max_tile // align) * align
    while t >= align:
        if dim % t == 0:
            return t
        t -= align
    return dim


# ----------------------------------------------------------------------------
# Tiled linear (M/N/K grid, f32 accumulator, bf16 MXU inputs)
# ----------------------------------------------------------------------------

def _linear_kernel(x_ref, w_ref, b_ref, o_ref, acc_ref, *, activation):
    @pl.when(pl.program_id(2) == 0)
    def _():
        acc_ref[...] = jnp.zeros_like(acc_ref)

    acc_ref[...] += jnp.dot(
        x_ref[...].astype(jnp.bfloat16),
        w_ref[...].astype(jnp.bfloat16),
        preferred_element_type=jnp.float32,
    )

    @pl.when(pl.program_id(2) == pl.num_programs(2) - 1)
    def _():
        y = acc_ref[...] + b_ref[...]
        if activation == "relu":
            y = jnp.maximum(y, 0.0)
        o_ref[...] = y.astype(o_ref.dtype)


def pallas_linear(x, w, b, activation="none", tm=256, tn=256, tk=512):
    """x: (M, K) @ w: (K, N) + b: (N,) -> (M, N), optional fused ReLU."""
    M, K = x.shape
    N = w.shape[1]
    tm = _choose_tile(M, tm, 8)
    tn = _choose_tile(N, tn, 128)
    tk = _choose_tile(K, tk, 128)
    kernel = functools.partial(_linear_kernel, activation=activation)
    return pl.pallas_call(
        kernel,
        out_shape=jax.ShapeDtypeStruct((M, N), jnp.float32),
        grid_spec=pltpu.PrefetchScalarGridSpec(
            num_scalar_prefetch=0,
            grid=(M // tm, N // tn, K // tk),
            in_specs=[
                pl.BlockSpec((tm, tk), lambda i, j, k: (i, k)),
                pl.BlockSpec((tk, tn), lambda i, j, k: (k, j)),
                pl.BlockSpec((1, tn), lambda i, j, k: (0, j)),
            ],
            out_specs=pl.BlockSpec((tm, tn), lambda i, j, k: (i, j)),
            scratch_shapes=[pltpu.VMEM((tm, tn), jnp.float32)],
        ),
        compiler_params=pltpu.CompilerParams(
            dimension_semantics=("parallel", "parallel", "arbitrary")),
        cost_estimate=pl.CostEstimate(
            flops=2 * M * N * K,
            transcendentals=0,
            bytes_accessed=4 * (M * K + K * N + M * N)),
    )(x, w, b.reshape(1, N))


# ----------------------------------------------------------------------------
# Fused output-projection + residual add + LayerNorm
# ----------------------------------------------------------------------------

def _proj_add_ln_kernel(a_ref, w_ref, b_ref, res_ref, g_ref, beta_ref, o_ref):
    y = jnp.dot(a_ref[...].astype(jnp.bfloat16),
                w_ref[...].astype(jnp.bfloat16),
                preferred_element_type=jnp.float32) + b_ref[...]
    x = res_ref[...] + y
    mu = jnp.mean(x, axis=-1, keepdims=True)
    var = jnp.mean(jnp.square(x - mu), axis=-1, keepdims=True)
    o_ref[...] = ((x - mu) * jax.lax.rsqrt(var + 1e-5) * g_ref[...]
                  + beta_ref[...]).astype(o_ref.dtype)


def pallas_proj_add_ln(a, w, b, res, g, beta, tm=256):
    M, D = a.shape
    tm = _choose_tile(M, tm, 8)
    return pl.pallas_call(
        _proj_add_ln_kernel,
        out_shape=jax.ShapeDtypeStruct((M, D), jnp.float32),
        grid=(M // tm,),
        in_specs=[
            pl.BlockSpec((tm, D), lambda i: (i, 0)),
            pl.BlockSpec((D, D), lambda i: (0, 0)),
            pl.BlockSpec((1, D), lambda i: (0, 0)),
            pl.BlockSpec((tm, D), lambda i: (i, 0)),
            pl.BlockSpec((1, D), lambda i: (0, 0)),
            pl.BlockSpec((1, D), lambda i: (0, 0)),
        ],
        out_specs=pl.BlockSpec((tm, D), lambda i: (i, 0)),
        compiler_params=pltpu.CompilerParams(dimension_semantics=("parallel",)),
    )(a, w, b.reshape(1, D), res, g.reshape(1, D), beta.reshape(1, D))


# ----------------------------------------------------------------------------
# Fused FFN (linear + ReLU + linear) + residual add + LayerNorm
# ----------------------------------------------------------------------------

def _ffn_add_ln_kernel(x_ref, w1_ref, b1_ref, w2_ref, b2_ref, g_ref, beta_ref, o_ref):
    x = x_ref[...]
    h1 = jnp.dot(x.astype(jnp.bfloat16), w1_ref[...].astype(jnp.bfloat16),
                 preferred_element_type=jnp.float32) + b1_ref[...]
    h1 = jnp.maximum(h1, 0.0)
    y = jnp.dot(h1.astype(jnp.bfloat16), w2_ref[...].astype(jnp.bfloat16),
                preferred_element_type=jnp.float32) + b2_ref[...]
    z = x + y
    mu = jnp.mean(z, axis=-1, keepdims=True)
    var = jnp.mean(jnp.square(z - mu), axis=-1, keepdims=True)
    o_ref[...] = ((z - mu) * jax.lax.rsqrt(var + 1e-5) * g_ref[...]
                  + beta_ref[...]).astype(o_ref.dtype)


def pallas_ffn_add_ln(x, ff1, ff2, ln, tm=256):
    M, D = x.shape
    F = ff1["w"].shape[1]
    tm = _choose_tile(M, tm, 8)
    return pl.pallas_call(
        _ffn_add_ln_kernel,
        out_shape=jax.ShapeDtypeStruct((M, D), jnp.float32),
        grid=(M // tm,),
        in_specs=[
            pl.BlockSpec((tm, D), lambda i: (i, 0)),
            pl.BlockSpec((D, F), lambda i: (0, 0)),
            pl.BlockSpec((1, F), lambda i: (0, 0)),
            pl.BlockSpec((F, D), lambda i: (0, 0)),
            pl.BlockSpec((1, D), lambda i: (0, 0)),
            pl.BlockSpec((1, D), lambda i: (0, 0)),
            pl.BlockSpec((1, D), lambda i: (0, 0)),
        ],
        out_specs=pl.BlockSpec((tm, D), lambda i: (i, 0)),
        compiler_params=pltpu.CompilerParams(dimension_semantics=("parallel",)),
    )(x, ff1["w"], ff1["b"].reshape(1, F), ff2["w"], ff2["b"].reshape(1, D),
      ln["g"].reshape(1, D), ln["b"].reshape(1, D))


# ----------------------------------------------------------------------------
# Multi-head scaled-dot-product attention core (one batch per grid step,
# all heads inside the kernel, lane-dense (Sq, D) output store)
# ----------------------------------------------------------------------------

def _mha_kernel(q_ref, kv_ref, m_ref, o_ref, *, h):
    Sq = q_ref.shape[1]
    D = q_ref.shape[2]
    dk = D // h
    scale = 1.0 / math.sqrt(dk)

    q = q_ref[0] * scale           # (Sq, D) f32, 1/sqrt(dk) folded into Q once
    kv = kv_ref[0]                 # (Sk, 2D): [K heads | V heads]
    mask = m_ref[0]                # (Sq, Sk), shared across heads

    outs = []
    for head in range(h):          # unrolled at trace time (h is small)
        qh = q[:, head * dk:(head + 1) * dk].astype(jnp.bfloat16)
        kh = kv[:, head * dk:(head + 1) * dk].astype(jnp.bfloat16)
        vh = kv[:, D + head * dk:D + (head + 1) * dk].astype(jnp.bfloat16)
        # Q @ K^T via contraction on the last dims (no explicit transpose op).
        s = jax.lax.dot_general(qh, kh, (((1,), (1,)), ((), ())),
                                preferred_element_type=jnp.float32)   # (Sq, Sk)
        s = jnp.where(mask > 0, s, jnp.float32(-1e9))
        s = s - jnp.max(s, axis=-1, keepdims=True)
        p = jnp.exp(s)
        p = p * pl.reciprocal(jnp.sum(p, axis=-1, keepdims=True), approx=True)
        outs.append(jnp.dot(p.astype(jnp.bfloat16), vh,
                            preferred_element_type=jnp.float32))      # (Sq, dk)

    o_ref[0] = jnp.concatenate(outs, axis=-1).astype(o_ref.dtype)     # (Sq, D)


def pallas_mha_core(q, kv, mask, h):
    """q: (B, Sq, D), kv: (B, Sk, 2D), mask: (B, Sq, Sk) -> (B, Sq, D) (heads concat)."""
    B, Sq, D = q.shape
    Sk = kv.shape[1]
    kernel = functools.partial(_mha_kernel, h=h)
    return pl.pallas_call(
        kernel,
        out_shape=jax.ShapeDtypeStruct((B, Sq, D), jnp.float32),
        grid=(B,),
        in_specs=[
            pl.BlockSpec((1, Sq, D), lambda b: (b, 0, 0)),
            pl.BlockSpec((1, Sk, 2 * D), lambda b: (b, 0, 0)),
            pl.BlockSpec((1, Sq, Sk), lambda b: (b, 0, 0)),
        ],
        out_specs=pl.BlockSpec((1, Sq, D), lambda b: (b, 0, 0)),
        compiler_params=pltpu.CompilerParams(dimension_semantics=("parallel",)),
    )(q, kv, mask)


# ----------------------------------------------------------------------------
# Parameter init (deterministic, in-script) and positional encoding
# ----------------------------------------------------------------------------

def _init_linear(key, din, dout):
    kw, kb = jax.random.split(key)
    return {
        "w": jax.random.normal(kw, (din, dout), jnp.float32) * 0.02,
        "b": jax.random.normal(kb, (dout,), jnp.float32) * 0.02,
    }


def _init_ln(d):
    return {"g": jnp.ones((d,), jnp.float32), "b": jnp.zeros((d,), jnp.float32)}


def _init_attn(key, d_model):
    ks = jax.random.split(key, 3)
    return {
        "wq": _init_linear(ks[0], d_model, d_model),
        "wkv": _init_linear(ks[1], d_model, 2 * d_model),   # fused K|V projection
        "wo": _init_linear(ks[2], d_model, d_model),
    }


def _init_enc_layer(key, d_model, d_ff):
    ks = jax.random.split(key, 3)
    return {
        "self_attn": _init_attn(ks[0], d_model),
        "ff1": _init_linear(ks[1], d_model, d_ff),
        "ff2": _init_linear(ks[2], d_ff, d_model),
        "ln1": _init_ln(d_model),
        "ln2": _init_ln(d_model),
    }


def _init_dec_layer(key, d_model, d_ff):
    ks = jax.random.split(key, 4)
    return {
        "self_attn": _init_attn(ks[0], d_model),
        "cross_attn": _init_attn(ks[1], d_model),
        "ff1": _init_linear(ks[2], d_model, d_ff),
        "ff2": _init_linear(ks[3], d_ff, d_model),
        "ln1": _init_ln(d_model),
        "ln2": _init_ln(d_model),
        "ln3": _init_ln(d_model),
    }


def sinusoidal_pe(max_len, d_model):
    pos = jnp.arange(max_len, dtype=jnp.float32)[:, None]
    div = jnp.exp(jnp.arange(0, d_model, 2, dtype=jnp.float32)
                  * (-math.log(10000.0) / d_model))
    pe = jnp.zeros((max_len, d_model), jnp.float32)
    pe = pe.at[:, 0::2].set(jnp.sin(pos * div))
    pe = pe.at[:, 1::2].set(jnp.cos(pos * div))
    return pe


def init_params(key, d_model, h, vocab_size, max_seq_len, N, d_ff):
    keys = jax.random.split(key, 2 + 2 * N)
    return {
        "embedding": jax.random.normal(keys[0], (vocab_size, d_model), jnp.float32) * 0.02,
        "pe": sinusoidal_pe(max_seq_len, d_model),
        "encoder": [_init_enc_layer(keys[2 + i], d_model, d_ff) for i in range(N)],
        "decoder": [_init_dec_layer(keys[2 + N + i], d_model, d_ff) for i in range(N)],
        "out": _init_linear(keys[1], d_model, vocab_size),
    }


# ----------------------------------------------------------------------------
# Model forward (thin XLA glue, compute in Pallas kernels)
# ----------------------------------------------------------------------------

def _attention_block(x_q, x_kv, mask, p, ln, h):
    """Self/cross attention sub-layer: LN(x_q + Wo @ MHA(x_q, x_kv))."""
    B, Sq, D = x_q.shape
    Sk = x_kv.shape[1]
    q = pallas_linear(x_q.reshape(B * Sq, D), p["wq"]["w"], p["wq"]["b"]).reshape(B, Sq, D)
    kv = pallas_linear(x_kv.reshape(B * Sk, D), p["wkv"]["w"], p["wkv"]["b"]).reshape(B, Sk, 2 * D)
    # Per-batch mask only (no head broadcast through HBM); PyTorch mask==0 -> -1e9 convention.
    m = jnp.broadcast_to(mask.astype(jnp.float32), (B, 1, Sq, Sk)).reshape(B, Sq, Sk)
    heads = pallas_mha_core(q, kv, m, h)                      # (B, Sq, D)
    out = pallas_proj_add_ln(heads.reshape(B * Sq, D),
                             p["wo"]["w"], p["wo"]["b"],
                             x_q.reshape(B * Sq, D),
                             ln["g"], ln["b"])
    return out.reshape(B, Sq, D)


def _ffn_block(x, p, ln):
    B, S, D = x.shape
    out = pallas_ffn_add_ln(x.reshape(B * S, D), p["ff1"], p["ff2"], ln)
    return out.reshape(B, S, D)


def encoder_layer(x, src_mask, p, h):
    x = _attention_block(x, x, src_mask, p["self_attn"], p["ln1"], h)
    x = _ffn_block(x, p, p["ln2"])
    return x


def decoder_layer(y, mem, memory_mask, tgt_mask, p, h):
    y = _attention_block(y, y, tgt_mask, p["self_attn"], p["ln1"], h)
    y = _attention_block(y, mem, memory_mask, p["cross_attn"], p["ln2"], h)
    y = _ffn_block(y, p, p["ln3"])
    return y


def make_forward(d_model, h):
    def forward(params, src, tgt, memory_mask, src_mask, tgt_mask):
        def embed(tokens):
            # TODO(synk): token gather + sinusoidal PE kept in XLA (cheap, no matmul).
            S = tokens.shape[1]
            e = jnp.take(params["embedding"], tokens, axis=0) * math.sqrt(d_model)
            return e + params["pe"][:S][None, :, :]

        src_e = embed(src)
        tgt_e = embed(tgt)

        x = src_e
        for lp in params["encoder"]:
            x = encoder_layer(x, src_mask, lp, h)
        mem = x

        y = tgt_e
        for lp in params["decoder"]:
            y = decoder_layer(y, mem, memory_mask, tgt_mask, lp, h)

        B, St, D = y.shape
        logits = pallas_linear(y.reshape(B * St, D),
                               params["out"]["w"], params["out"]["b"])
        return logits.reshape(B, St, -1)

    return jax.jit(forward)


# ----------------------------------------------------------------------------
# Main
# ----------------------------------------------------------------------------

if __name__ == "__main__":
    # Small hyper-parameters consistent with the module's __init__ signature.
    d_model, h, vocab_size, max_seq_len, N, d_ff = 32, 4, 50, 16, 2, 64
    B, S_src, S_tgt = 2, 8, 8

    key = jax.random.PRNGKey(0)
    k_param, k_src, k_tgt = jax.random.split(key, 3)

    params = init_params(k_param, d_model, h, vocab_size, max_seq_len, N, d_ff)

    src = jax.random.randint(k_src, (B, S_src), 0, vocab_size, dtype=jnp.int32)
    tgt = jax.random.randint(k_tgt, (B, S_tgt), 0, vocab_size, dtype=jnp.int32)

    # Masks: 1 = attend, 0 = masked (PyTorch `masked_fill(mask == 0, -1e9)` convention).
    src_mask = jnp.ones((B, 1, 1, S_src), jnp.float32)
    memory_mask = jnp.ones((B, 1, 1, S_src), jnp.float32)
    tgt_mask = jnp.tril(jnp.ones((S_tgt, S_tgt), jnp.float32))[None, None, :, :]

    forward = make_forward(d_model, h)
    logits = forward(params, src, tgt, memory_mask, src_mask, tgt_mask)
    logits = jax.block_until_ready(logits)

    assert logits.shape == (B, S_tgt, vocab_size), logits.shape
    assert bool(jnp.all(jnp.isfinite(logits)))
    print("KERNEL_OK")
</pallas_src>

<mosaic_0001>
module attributes {stable_mosaic.version = 11 : i64} {
  func.func @_linear_kernel(%arg0: i32, %arg1: i32, %arg2: i32, %arg3: memref<16x32xf32, #tpu.memory_space<vmem>>, %arg4: memref<32x32xf32, #tpu.memory_space<vmem>>, %arg5: memref<1x32xf32, #tpu.memory_space<vmem>>, %arg6: memref<16x32xf32, #tpu.memory_space<vmem>>, %arg7: memref<16x32xf32, #tpu.memory_space<vmem>>) attributes {dimension_semantics = [#tpu.dimension_semantics<parallel>, #tpu.dimension_semantics<parallel>, #tpu.dimension_semantics<arbitrary>], iteration_bounds = array<i64: 1, 1, 1>, scalar_prefetch = 0 : i64, scratch_operands = 1 : i64, tpu.core_type = #tpu.core_type<tc>, window_params = [{transform_indices = @transform_0, window_bounds = array<i64: 16, 32>}, {transform_indices = @transform_1, window_bounds = array<i64: 32, 32>}, {transform_indices = @transform_2, window_bounds = array<i64: 1, 32>}, {transform_indices = @transform_3, window_bounds = array<i64: 16, 32>}]} {
    %c0_i32 = arith.constant 0 : i32
    %0 = arith.cmpi eq, %arg2, %c0_i32 : i32
    %1 = arith.extui %0 : i1 to i32
    %c0_i32_0 = arith.constant 0 : i32
    %2 = arith.cmpi ne, %1, %c0_i32_0 : i32
    scf.if %2 {
      %cst_10 = arith.constant 0.000000e+00 : f32
      %14 = vector.broadcast %cst_10 : f32 to vector<16x32xf32>
      %c0_11 = arith.constant 0 : index
      %c0_12 = arith.constant 0 : index
      %15 = vector.load %arg7[%c0_11, %c0_12] : memref<16x32xf32, #tpu.memory_space<vmem>>, vector<16x32xf32>
      tpu.vector_store %arg7[%c0_11, %c0_12], %14 {strides = array<i32>} : memref<16x32xf32, #tpu.memory_space<vmem>>, vector<16x32xf32>,
    } else {
    }
    %c0 = arith.constant 0 : index
    %c0_1 = arith.constant 0 : index
    %3 = vector.load %arg7[%c0, %c0_1] : memref<16x32xf32, #tpu.memory_space<vmem>>, vector<16x32xf32>
    %c0_2 = arith.constant 0 : index
    %c0_3 = arith.constant 0 : index
    %4 = vector.load %arg3[%c0_2, %c0_3] : memref<16x32xf32, #tpu.memory_space<vmem>>, vector<16x32xf32>
    %5 = arith.truncf %4 : vector<16x32xf32> to vector<16x32xbf16>
    %c0_4 = arith.constant 0 : index
    %c0_5 = arith.constant 0 : index
    %6 = vector.load %arg4[%c0_4, %c0_5] : memref<32x32xf32, #tpu.memory_space<vmem>>, vector<32x32xf32>
    %7 = arith.truncf %6 : vector<32x32xf32> to vector<32x32xbf16>
    %cst = arith.constant dense<0.000000e+00> : vector<16x32xf32>
    %8 = tpu.matmul %5, %7, %cst {dimension_numbers = #tpu.dot_dimension_numbers<[1], [0], [0], [1], [0, 0, 1, 1], [], []>} : vector<16x32xbf16>, vector<32x32xbf16>, vector<16x32xf32> -> vector<16x32xf32>
    %9 = arith.addf %3, %8 : vector<16x32xf32>
    %c0_6 = arith.constant 0 : index
    %c0_7 = arith.constant 0 : index
    %10 = vector.load %arg7[%c0_6, %c0_7] : memref<16x32xf32, #tpu.memory_space<vmem>>, vector<16x32xf32>
    tpu.vector_store %arg7[%c0_6, %c0_7], %9 {strides = array<i32>} : memref<16x32xf32, #tpu.memory_space<vmem>>, vector<16x32xf32>,
    %c0_i32_8 = arith.constant 0 : i32
    %11 = arith.cmpi eq, %arg2, %c0_i32_8 : i32
    %12 = arith.extui %11 : i1 to i32
    %c0_i32_9 = arith.constant 0 : i32
    %13 = arith.cmpi ne, %12, %c0_i32_9 : i32
    scf.if %13 {
      %c0_10 = arith.constant 0 : index
      %c0_11 = arith.constant 0 : index
      %14 = vector.load %arg7[%c0_10, %c0_11] : memref<16x32xf32, #tpu.memory_space<vmem>>, vector<16x32xf32>
      %c0_12 = arith.constant 0 : index
      %c0_13 = arith.constant 0 : index
      %15 = vector.load %arg5[%c0_12, %c0_13] : memref<1x32xf32, #tpu.memory_space<vmem>>, vector<1x32xf32>
      %16 = vector.broadcast %15 : vector<1x32xf32> to vector<16x32xf32>
      %17 = arith.addf %14, %16 : vector<16x32xf32>
      %c0_14 = arith.constant 0 : index
      %c0_15 = arith.constant 0 : index
      %18 = vector.load %arg6[%c0_14, %c0_15] : memref<16x32xf32, #tpu.memory_space<vmem>>, vector<16x32xf32>
      tpu.vector_store %arg6[%c0_14, %c0_15], %17 {strides = array<i32>} : memref<16x32xf32, #tpu.memory_space<vmem>>, vector<16x32xf32>,
    } else {
    }
    return
  }
  func.func @transform_0(%arg0: i32, %arg1: i32, %arg2: i32) -> (i32, i32) {
    %c0_i32 = arith.constant 0 : i32
    return %arg0, %arg2 : i32, i32
  }
  func.func @transform_1(%arg0: i32, %arg1: i32, %arg2: i32) -> (i32, i32) {
    %c0_i32 = arith.constant 0 : i32
    return %arg2, %arg1 : i32, i32
  }
  func.func @transform_2(%arg0: i32, %arg1: i32, %arg2: i32) -> (i32, i32) {
    %c0_i32 = arith.constant 0 : i32
    %c0_i32_0 = arith.constant 0 : i32
    return %c0_i32, %arg1 : i32, i32
  }
  func.func @transform_3(%arg0: i32, %arg1: i32, %arg2: i32) -> (i32, i32) {
    %c0_i32 = arith.constant 0 : i32
    return %arg0, %arg1 : i32, i32
  }
}

module attributes {stable_mosaic.version = 11 : i64} {
  func.func @_linear_kernel(%arg0: i32, %arg1: i32, %arg2: i32, %arg3: memref<16x32xf32, #tpu.memory_space<vmem>>, %arg4: memref<32x64xf32, #tpu.memory_space<vmem>>, %arg5: memref<1x64xf32, #tpu.memory_space<vmem>>, %arg6: memref<16x64xf32, #tpu.memory_space<vmem>>, %arg7: memref<16x64xf32, #tpu.memory_space<vmem>>) attributes {dimension_semantics = [#tpu.dimension_semantics<parallel>, #tpu.dimension_semantics<parallel>, #tpu.dimension_semantics<arbitrary>], iteration_bounds = array<i64: 1, 1, 1>, scalar_prefetch = 0 : i64, scratch_operands = 1 : i64, tpu.core_type = #tpu.core_type<tc>, window_params = [{transform_indices = @transform_0, window_bounds = array<i64: 16, 32>}, {transform_indices = @transform_1, window_bounds = array<i64: 32, 64>}, {transform_indices = @transform_2, window_bounds = array<i64: 1, 64>}, {transform_indices = @transform_3, window_bounds = array<i64: 16, 64>}]} {
    %c0_i32 = arith.constant 0 : i32
    %0 = arith.cmpi eq, %arg2, %c0_i32 : i32
    %1 = arith.extui %0 : i1 to i32
    %c0_i32_0 = arith.constant 0 : i32
    %2 = arith.cmpi ne, %1, %c0_i32_0 : i32
    scf.if %2 {
      %cst_10 = arith.constant 0.000000e+00 : f32
      %14 = vector.broadcast %cst_10 : f32 to vector<16x64xf32>
      %c0_11 = arith.constant 0 : index
      %c0_12 = arith.constant 0 : index
      %15 = vector.load %arg7[%c0_11, %c0_12] : memref<16x64xf32, #tpu.memory_space<vmem>>, vector<16x64xf32>
      tpu.vector_store %arg7[%c0_11, %c0_12], %14 {strides = array<i32>} : memref<16x64xf32, #tpu.memory_space<vmem>>, vector<16x64xf32>,
    } else {
    }
    %c0 = arith.constant 0 : index
    %c0_1 = arith.constant 0 : index
    %3 = vector.load %arg7[%c0, %c0_1] : memref<16x64xf32, #tpu.memory_space<vmem>>, vector<16x64xf32>
    %c0_2 = arith.constant 0 : index
    %c0_3 = arith.constant 0 : index
    %4 = vector.load %arg3[%c0_2, %c0_3] : memref<16x32xf32, #tpu.memory_space<vmem>>, vector<16x32xf32>
    %5 = arith.truncf %4 : vector<16x32xf32> to vector<16x32xbf16>
    %c0_4 = arith.constant 0 : index
    %c0_5 = arith.constant 0 : index
    %6 = vector.load %arg4[%c0_4, %c0_5] : memref<32x64xf32, #tpu.memory_space<vmem>>, vector<32x64xf32>
    %7 = arith.truncf %6 : vector<32x64xf32> to vector<32x64xbf16>
    %cst = arith.constant dense<0.000000e+00> : vector<16x64xf32>
    %8 = tpu.matmul %5, %7, %cst {dimension_numbers = #tpu.dot_dimension_numbers<[1], [0], [0], [1], [0, 0, 1, 1], [], []>} : vector<16x32xbf16>, vector<32x64xbf16>, vector<16x64xf32> -> vector<16x64xf32>
    %9 = arith.addf %3, %8 : vector<16x64xf32>
    %c0_6 = arith.constant 0 : index
    %c0_7 = arith.constant 0 : index
    %10 = vector.load %arg7[%c0_6, %c0_7] : memref<16x64xf32, #tpu.memory_space<vmem>>, vector<16x64xf32>
    tpu.vector_store %arg7[%c0_6, %c0_7], %9 {strides = array<i32>} : memref<16x64xf32, #tpu.memory_space<vmem>>, vector<16x64xf32>,
    %c0_i32_8 = arith.constant 0 : i32
    %11 = arith.cmpi eq, %arg2, %c0_i32_8 : i32
    %12 = arith.extui %11 : i1 to i32
    %c0_i32_9 = arith.constant 0 : i32
    %13 = arith.cmpi ne, %12, %c0_i32_9 : i32
    scf.if %13 {
      %c0_10 = arith.constant 0 : index
      %c0_11 = arith.constant 0 : index
      %14 = vector.load %arg7[%c0_10, %c0_11] : memref<16x64xf32, #tpu.memory_space<vmem>>, vector<16x64xf32>
      %c0_12 = arith.constant 0 : index
      %c0_13 = arith.constant 0 : index
      %15 = vector.load %arg5[%c0_12, %c0_13] : memref<1x64xf32, #tpu.memory_space<vmem>>, vector<1x64xf32>
      %16 = vector.broadcast %15 : vector<1x64xf32> to vector<16x64xf32>
      %17 = arith.addf %14, %16 : vector<16x64xf32>
      %c0_14 = arith.constant 0 : index
      %c0_15 = arith.constant 0 : index
      %18 = vector.load %arg6[%c0_14, %c0_15] : memref<16x64xf32, #tpu.memory_space<vmem>>, vector<16x64xf32>
      tpu.vector_store %arg6[%c0_14, %c0_15], %17 {strides = array<i32>} : memref<16x64xf32, #tpu.memory_space<vmem>>, vector<16x64xf32>,
    } else {
    }
    return
  }
  func.func @transform_0(%arg0: i32, %arg1: i32, %arg2: i32) -> (i32, i32) {
    %c0_i32 = arith.constant 0 : i32
    return %arg0, %arg2 : i32, i32
  }
  func.func @transform_1(%arg0: i32, %arg1: i32, %arg2: i32) -> (i32, i32) {
    %c0_i32 = arith.constant 0 : i32
    return %arg2, %arg1 : i32, i32
  }
  func.func @transform_2(%arg0: i32, %arg1: i32, %arg2: i32) -> (i32, i32) {
    %c0_i32 = arith.constant 0 : i32
    %c0_i32_0 = arith.constant 0 : i32
    return %c0_i32, %arg1 : i32, i32
  }
  func.func @transform_3(%arg0: i32, %arg1: i32, %arg2: i32) -> (i32, i32) {
    %c0_i32 = arith.constant 0 : i32
    return %arg0, %arg1 : i32, i32
  }
}

module attributes {stable_mosaic.version = 11 : i64} {
  func.func @_mha_kernel(%arg0: i32, %arg1: memref<1x8x32xf32, #tpu.memory_space<vmem>>, %arg2: memref<1x8x64xf32, #tpu.memory_space<vmem>>, %arg3: memref<1x8x8xf32, #tpu.memory_space<vmem>>, %arg4: memref<1x8x32xf32, #tpu.memory_space<vmem>>) attributes {dimension_semantics = [#tpu.dimension_semantics<parallel>], iteration_bounds = array<i64: 2>, scalar_prefetch = 0 : i64, scratch_operands = 0 : i64, tpu.core_type = #tpu.core_type<tc>, window_params = [{transform_indices = @transform_0, window_bounds = array<i64: 1, 8, 32>}, {transform_indices = @transform_1, window_bounds = array<i64: 1, 8, 64>}, {transform_indices = @transform_2, window_bounds = array<i64: 1, 8, 8>}, {transform_indices = @transform_3, window_bounds = array<i64: 1, 8, 32>}]} {
    %c0 = arith.constant 0 : index
    %c0_0 = arith.constant 0 : index
    %c0_1 = arith.constant 0 : index
    %0 = vector.load %arg1[%c0, %c0_0, %c0_1] : memref<1x8x32xf32, #tpu.memory_space<vmem>>, vector<1x8x32xf32>
    %1 = vector.shape_cast %0 : vector<1x8x32xf32> to vector<8x32xf32>
    %cst = arith.constant 0.353553385 : f32
    %2 = vector.broadcast %cst : f32 to vector<8x32xf32>
    %3 = arith.mulf %1, %2 : vector<8x32xf32>
    %c0_2 = arith.constant 0 : index
    %c0_3 = arith.constant 0 : index
    %c0_4 = arith.constant 0 : index
    %4 = vector.load %arg2[%c0_2, %c0_3, %c0_4] : memref<1x8x64xf32, #tpu.memory_space<vmem>>, vector<1x8x64xf32>
    %5 = vector.shape_cast %4 : vector<1x8x64xf32> to vector<8x64xf32>
    %c0_5 = arith.constant 0 : index
    %c0_6 = arith.constant 0 : index
    %c0_7 = arith.constant 0 : index
    %6 = vector.load %arg3[%c0_5, %c0_6, %c0_7] : memref<1x8x8xf32, #tpu.memory_space<vmem>>, vector<1x8x8xf32>
    %7 = vector.shape_cast %6 : vector<1x8x8xf32> to vector<8x8xf32>
    %8 = vector.extract_strided_slice %3 {offsets = [0, 0], sizes = [8, 8], strides = [1, 1]} : vector<8x32xf32> to vector<8x8xf32>
    %9 = arith.truncf %8 : vector<8x8xf32> to vector<8x8xbf16>
    %10 = vector.extract_strided_slice %5 {offsets = [0, 0], sizes = [8, 8], strides = [1, 1]} : vector<8x64xf32> to vector<8x8xf32>
    %11 = arith.truncf %10 : vector<8x8xf32> to vector<8x8xbf16>
    %12 = vector.extract_strided_slice %5 {offsets = [0, 32], sizes = [8, 8], strides = [1, 1]} : vector<8x64xf32> to vector<8x8xf32>
    %13 = arith.truncf %12 : vector<8x8xf32> to vector<8x8xbf16>
    %cst_8 = arith.constant dense<0.000000e+00> : vector<8x8xf32>
    %14 = tpu.matmul %9, %11, %cst_8 {dimension_numbers = #tpu.dot_dimension_numbers<[1], [1], [0], [0], [0, 0, 1, 0], [], []>} : vector<8x8xbf16>, vector<8x8xbf16>, vector<8x8xf32> -> vector<8x8xf32>
    %cst_9 = arith.constant 0.000000e+00 : f32
    %15 = vector.broadcast %cst_9 : f32 to vector<8x8xf32>
    %16 = arith.cmpf ogt, %7, %15 : vector<8x8xf32>
    %cst_10 = arith.constant -1.000000e+09 : f32
    %17 = vector.broadcast %cst_10 : f32 to vector<8x8xf32>
    %18 = arith.select %16, %14, %17 : vector<8x8xi1>, vector<8x8xf32>
    %cst_11 = arith.constant dense<0xFF800000> : vector<8xf32>
    %19 = vector.multi_reduction <maximumf>, %18, %cst_11 [1] : vector<8x8xf32> to vector<8xf32>
    %20 = vector.shape_cast %19 : vector<8xf32> to vector<8x1xf32>
    %21 = vector.broadcast %20 : vector<8x1xf32> to vector<8x8xf32>
    %22 = arith.subf %18, %21 : vector<8x8xf32>
    %23 = math.exp %22 : vector<8x8xf32>
    %cst_12 = arith.constant dense<0.000000e+00> : vector<8xf32>
    %24 = vector.multi_reduction <add>, %23, %cst_12 [1] : vector<8x8xf32> to vector<8xf32>
    %25 = vector.shape_cast %24 : vector<8xf32> to vector<8x1xf32>
    %26 = tpu.reciprocal %25 {approx = true} : vector<8x1xf32> -> vector<8x1xf32>
    %27 = vector.broadcast %26 : vector<8x1xf32> to vector<8x8xf32>
    %28 = arith.mulf %23, %27 : vector<8x8xf32>
    %29 = arith.truncf %28 : vector<8x8xf32> to vector<8x8xbf16>
    %cst_13 = arith.constant dense<0.000000e+00> : vector<8x8xf32>
    %30 = tpu.matmul %29, %13, %cst_13 {dimension_numbers = #tpu.dot_dimension_numbers<[1], [0], [0], [1], [0, 0, 1, 1], [], []>} : vector<8x8xbf16>, vector<8x8xbf16>, vector<8x8xf32> -> vector<8x8xf32>
    %31 = vector.extract_strided_slice %3 {offsets = [0, 8], sizes = [8, 8], strides = [1, 1]} : vector<8x32xf32> to vector<8x8xf32>
    %32 = arith.truncf %31 : vector<8x8xf32> to vector<8x8xbf16>
    %33 = vector.extract_strided_slice %5 {offsets = [0, 8], sizes = [8, 8], strides = [1, 1]} : vector<8x64xf32> to vector<8x8xf32>
    %34 = arith.truncf %33 : vector<8x8xf32> to vector<8x8xbf16>
    %35 = vector.extract_strided_slice %5 {offsets = [0, 40], sizes = [8, 8], strides = [1, 1]} : vector<8x64xf32> to vector<8x8xf32>
    %36 = arith.truncf %35 : vector<8x8xf32> to vector<8x8xbf16>
    %cst_14 = arith.constant dense<0.000000e+00> : vector<8x8xf32>
    %37 = tpu.matmul %32, %34, %cst_14 {dimension_numbers = #tpu.dot_dimension_numbers<[1], [1], [0], [0], [0, 0, 1, 0], [], []>} : vector<8x8xbf16>, vector<8x8xbf16>, vector<8x8xf32> -> vector<8x8xf32>
    %cst_15 = arith.constant 0.000000e+00 : f32
    %38 = vector.broadcast %cst_15 : f32 to vector<8x8xf32>
    %39 = arith.cmpf ogt, %7, %38 : vector<8x8xf32>
    %cst_16 = arith.constant -1.000000e+09 : f32
    %40 = vector.broadcast %cst_16 : f32 to vector<8x8xf32>
    %41 = arith.select %39, %37, %40 : vector<8x8xi1>, vector<8x8xf32>
    %cst_17 = arith.constant dense<0xFF800000> : vector<8xf32>
    %42 = vector.multi_reduction <maximumf>, %41, %cst_17 [1] : vector<8x8xf32> to vector<8xf32>
    %43 = vector.shape_cast %42 : vector<8xf32> to vector<8x1xf32>
    %44 = vector.broadcast %43 : vector<8x1xf32> to vector<8x8xf32>
    %45 = arith.subf %41, %44 : vector<8x8xf32>
    %46 = math.exp %45 : vector<8x8xf32>
    %cst_18 = arith.constant dense<0.000000e+00> : vector<8xf32>
    %47 = vector.multi_reduction <add>, %46, %cst_18 [1] : vector<8x8xf32> to vector<8xf32>
    %48 = vector.shape_cast %47 : vector<8xf32> to vector<8x1xf32>
    %49 = tpu.reciprocal %48 {approx = true} : vector<8x1xf32> -> vector<8x1xf32>
    %50 = vector.broadcast %49 : vector<8x1xf32> to vector<8x8xf32>
    %51 = arith.mulf %46, %50 : vector<8x8xf32>
    %52 = arith.truncf %51 : vector<8x8xf32> to vector<8x8xbf16>
    %cst_19 = arith.constant dense<0.000000e+00> : vector<8x8xf32>
    %53 = tpu.matmul %52, %36, %cst_19 {dimension_numbers = #tpu.dot_dimension_numbers<[1], [0], [0], [1], [0, 0, 1, 1], [], []>} : vector<8x8xbf16>, vector<8x8xbf16>, vector<8x8xf32> -> vector<8x8xf32>
    %54 = vector.extract_strided_slice %3 {offsets = [0, 16], sizes = [8, 8], strides = [1, 1]} : vector<8x32xf32> to vector<8x8xf32>
    %55 = arith.truncf %54 : vector<8x8xf32> to vector<8x8xbf16>
    %56 = vector.extract_strided_slice %5 {offsets = [0, 16], sizes = [8, 8], strides = [1, 1]} : vector<8x64xf32> to vector<8x8xf32>
    %57 = arith.truncf %56 : vector<8x8xf32> to vector<8x8xbf16>
    %58 = vector.extract_strided_slice %5 {offsets = [0, 48], sizes = [8, 8], strides = [1, 1]} : vector<8x64xf32> to vector<8x8xf32>
    %59 = arith.truncf %58 : vector<8x8xf32> to vector<8x8xbf16>
    %cst_20 = arith.constant dense<0.000000e+00> : vector<8x8xf32>
    %60 = tpu.matmul %55, %57, %cst_20 {dimension_numbers = #tpu.dot_dimension_numbers<[1], [1], [0], [0], [0, 0, 1, 0], [], []>} : vector<8x8xbf16>, vector<8x8xbf16>, vector<8x8xf32> -> vector<8x8xf32>
    %cst_21 = arith.constant 0.000000e+00 : f32
    %61 = vector.broadcast %cst_21 : f32 to vector<8x8xf32>
    %62 = arith.cmpf ogt, %7, %61 : vector<8x8xf32>
    %cst_22 = arith.constant -1.000000e+09 : f32
    %63 = vector.broadcast %cst_22 : f32 to vector<8x8xf32>
    %64 = arith.select %62, %60, %63 : vector<8x8xi1>, vector<8x8xf32>
    %cst_23 = arith.constant dense<0xFF800000> : vector<8xf32>
    %65 = vector.multi_reduction <maximumf>, %64, %cst_23 [1] : vector<8x8xf32> to vector<8xf32>
    %66 = vector.shape_cast %65 : vector<8xf32> to vector<8x1xf32>
    %67 = vector.broadcast %66 : vector<8x1xf32> to vector<8x8xf32>
    %68 = arith.subf %64, %67 : vector<8x8xf32>
    %69 = math.exp %68 : vector<8x8xf32>
    %cst_24 = arith.constant dense<0.000000e+00> : vector<8xf32>
    %70 = vector.multi_reduction <add>, %69, %cst_24 [1] : vector<8x8xf32> to vector<8xf32>
    %71 = vector.shape_cast %70 : vector<8xf32> to vector<8x1xf32>
    %72 = tpu.reciprocal %71 {approx = true} : vector<8x1xf32> -> vector<8x1xf32>
    %73 = vector.broadcast %72 : vector<8x1xf32> to vector<8x8xf32>
    %74 = arith.mulf %69, %73 : vector<8x8xf32>
    %75 = arith.truncf %74 : vector<8x8xf32> to vector<8x8xbf16>
    %cst_25 = arith.constant dense<0.000000e+00> : vector<8x8xf32>
    %76 = tpu.matmul %75, %59, %cst_25 {dimension_numbers = #tpu.dot_dimension_numbers<[1], [0], [0], [1], [0, 0, 1, 1], [], []>} : vector<8x8xbf16>, vector<8x8xbf16>, vector<8x8xf32> -> vector<8x8xf32>
    %77 = vector.extract_strided_slice %3 {offsets = [0, 24], sizes = [8, 8], strides = [1, 1]} : vector<8x32xf32> to vector<8x8xf32>
    %78 = arith.truncf %77 : vector<8x8xf32> to vector<8x8xbf16>
    %79 = vector.extract_strided_slice %5 {offsets = [0, 24], sizes = [8, 8], strides = [1, 1]} : vector<8x64xf32> to vector<8x8xf32>
    %80 = arith.truncf %79 : vector<8x8xf32> to vector<8x8xbf16>
    %81 = vector.extract_strided_slice %5 {offsets = [0, 56], sizes = [8, 8], strides = [1, 1]} : vector<8x64xf32> to vector<8x8xf32>
    %82 = arith.truncf %81 : vector<8x8xf32> to vector<8x8xbf16>
    %cst_26 = arith.constant dense<0.000000e+00> : vector<8x8xf32>
    %83 = tpu.matmul %78, %80, %cst_26 {dimension_numbers = #tpu.dot_dimension_numbers<[1], [1], [0], [0], [0, 0, 1, 0], [], []>} : vector<8x8xbf16>, vector<8x8xbf16>, vector<8x8xf32> -> vector<8x8xf32>
    %cst_27 = arith.constant 0.000000e+00 : f32
    %84 = vector.broadcast %cst_27 : f32 to vector<8x8xf32>
    %85 = arith.cmpf ogt, %7, %84 : vector<8x8xf32>
    %cst_28 = arith.constant -1.000000e+09 : f32
    %86 = vector.broadcast %cst_28 : f32 to vector<8x8xf32>
    %87 = arith.select %85, %83, %86 : vector<8x8xi1>, vector<8x8xf32>
    %cst_29 = arith.constant dense<0xFF800000> : vector<8xf32>
    %88 = vector.multi_reduction <maximumf>, %87, %cst_29 [1] : vector<8x8xf32> to vector<8xf32>
    %89 = vector.shape_cast %88 : vector<8xf32> to vector<8x1xf32>
    %90 = vector.broadcast %89 : vector<8x1xf32> to vector<8x8xf32>
    %91 = arith.subf %87, %90 : vector<8x8xf32>
    %92 = math.exp %91 : vector<8x8xf32>
    %cst_30 = arith.constant dense<0.000000e+00> : vector<8xf32>
    %93 = vector.multi_reduction <add>, %92, %cst_30 [1] : vector<8x8xf32> to vector<8xf32>
    %94 = vector.shape_cast %93 : vector<8xf32> to vector<8x1xf32>
    %95 = tpu.reciprocal %94 {approx = true} : vector<8x1xf32> -> vector<8x1xf32>
    %96 = vector.broadcast %95 : vector<8x1xf32> to vector<8x8xf32>
    %97 = arith.mulf %92, %96 : vector<8x8xf32>
    %98 = arith.truncf %97 : vector<8x8xf32> to vector<8x8xbf16>
    %cst_31 = arith.constant dense<0.000000e+00> : vector<8x8xf32>
    %99 = tpu.matmul %98, %82, %cst_31 {dimension_numbers = #tpu.dot_dimension_numbers<[1], [0], [0], [1], [0, 0, 1, 1], [], []>} : vector<8x8xbf16>, vector<8x8xbf16>, vector<8x8xf32> -> vector<8x8xf32>
    %100 = tpu.concatenate %30, %53, %76, %99 in 1 : vector<8x8xf32>, vector<8x8xf32>, vector<8x8xf32>, vector<8x8xf32> -> vector<8x32xf32>
    %c0_32 = arith.constant 0 : index
    %c0_33 = arith.constant 0 : index
    %c0_34 = arith.constant 0 : index
    %101 = vector.load %arg4[%c0_32, %c0_33, %c0_34] : memref<1x8x32xf32, #tpu.memory_space<vmem>>, vector<1x8x32xf32>
    %102 = vector.shape_cast %101 : vector<1x8x32xf32> to vector<8x32xf32>
    %103 = vector.shape_cast %100 : vector<8x32xf32> to vector<1x8x32xf32>
    tpu.vector_store %arg4[%c0_32, %c0_33, %c0_34], %103 {strides = array<i32>} : memref<1x8x32xf32, #tpu.memory_space<vmem>>, vector<1x8x32xf32>,
    return
  }
  func.func @transform_0(%arg0: i32) -> (i32, i32, i32) {
    %c0_i32 = arith.constant 0 : i32
    %c0_i32_0 = arith.constant 0 : i32
    %c0_i32_1 = arith.constant 0 : i32
    return %arg0, %c0_i32, %c0_i32_0 : i32, i32, i32
  }
  func.func @transform_1(%arg0: i32) -> (i32, i32, i32) {
    %c0_i32 = arith.constant 0 : i32
    %c0_i32_0 = arith.constant 0 : i32
    %c0_i32_1 = arith.constant 0 : i32
    return %arg0, %c0_i32, %c0_i32_0 : i32, i32, i32
  }
  func.func @transform_2(%arg0: i32) -> (i32, i32, i32) {
    %c0_i32 = arith.constant 0 : i32
    %c0_i32_0 = arith.constant 0 : i32
    %c0_i32_1 = arith.constant 0 : i32
    return %arg0, %c0_i32, %c0_i32_0 : i32, i32, i32
  }
  func.func @transform_3(%arg0: i32) -> (i32, i32, i32) {
    %c0_i32 = arith.constant 0 : i32
    %c0_i32_0 = arith.constant 0 : i32
    %c0_i32_1 = arith.constant 0 : i32
    return %arg0, %c0_i32, %c0_i32_0 : i32, i32, i32
  }
}

module attributes {stable_mosaic.version = 11 : i64} {
  func.func @_proj_add_ln_kernel(%arg0: i32, %arg1: memref<16x32xf32, #tpu.memory_space<vmem>>, %arg2: memref<32x32xf32, #tpu.memory_space<vmem>>, %arg3: memref<1x32xf32, #tpu.memory_space<vmem>>, %arg4: memref<16x32xf32, #tpu.memory_space<vmem>>, %arg5: memref<1x32xf32, #tpu.memory_space<vmem>>, %arg6: memref<1x32xf32, #tpu.memory_space<vmem>>, %arg7: memref<16x32xf32, #tpu.memory_space<vmem>>) attributes {dimension_semantics = [#tpu.dimension_semantics<parallel>], iteration_bounds = array<i64: 1>, scalar_prefetch = 0 : i64, scratch_operands = 0 : i64, tpu.core_type = #tpu.core_type<tc>, window_params = [{transform_indices = @transform_0, window_bounds = array<i64: 16, 32>}, {pipeline_mode = #tpu.pipeline_mode<synchronous>, transform_indices = @transform_1, window_bounds = array<i64: 32, 32>}, {pipeline_mode = #tpu.pipeline_mode<synchronous>, transform_indices = @transform_2, window_bounds = array<i64: 1, 32>}, {transform_indices = @transform_3, window_bounds = array<i64: 16, 32>}, {pipeline_mode = #tpu.pipeline_mode<synchronous>, transform_indices = @transform_4, window_bounds = array<i64: 1, 32>}, {pipeline_mode = #tpu.pipeline_mode<synchronous>, transform_indices = @transform_5, window_bounds = array<i64: 1, 32>}, {transform_indices = @transform_6, window_bounds = array<i64: 16, 32>}]} {
    %c0 = arith.constant 0 : index
    %c0_0 = arith.constant 0 : index
    %0 = vector.load %arg1[%c0, %c0_0] : memref<16x32xf32, #tpu.memory_space<vmem>>, vector<16x32xf32>
    %1 = arith.truncf %0 : vector<16x32xf32> to vector<16x32xbf16>
    %c0_1 = arith.constant 0 : index
    %c0_2 = arith.constant 0 : index
    %2 = vector.load %arg2[%c0_1, %c0_2] : memref<32x32xf32, #tpu.memory_space<vmem>>, vector<32x32xf32>
    %3 = arith.truncf %2 : vector<32x32xf32> to vector<32x32xbf16>
    %cst = arith.constant dense<0.000000e+00> : vector<16x32xf32>
    %4 = tpu.matmul %1, %3, %cst {dimension_numbers = #tpu.dot_dimension_numbers<[1], [0], [0], [1], [0, 0, 1, 1], [], []>} : vector<16x32xbf16>, vector<32x32xbf16>, vector<16x32xf32> -> vector<16x32xf32>
    %c0_3 = arith.constant 0 : index
    %c0_4 = arith.constant 0 : index
    %5 = vector.load %arg3[%c0_3, %c0_4] : memref<1x32xf32, #tpu.memory_space<vmem>>, vector<1x32xf32>
    %6 = vector.broadcast %5 : vector<1x32xf32> to vector<16x32xf32>
    %7 = arith.addf %4, %6 : vector<16x32xf32>
    %c0_5 = arith.constant 0 : index
    %c0_6 = arith.constant 0 : index
    %8 = vector.load %arg4[%c0_5, %c0_6] : memref<16x32xf32, #tpu.memory_space<vmem>>, vector<16x32xf32>
    %9 = arith.addf %8, %7 : vector<16x32xf32>
    %cst_7 = arith.constant dense<0.000000e+00> : vector<16xf32>
    %10 = vector.multi_reduction <add>, %9, %cst_7 [1] : vector<16x32xf32> to vector<16xf32>
    %11 = vector.shape_cast %10 : vector<16xf32> to vector<16x1xf32>
    %cst_8 = arith.constant 3.200000e+01 : f32
    %12 = vector.broadcast %cst_8 : f32 to vector<16x1xf32>
    %13 = arith.divf %11, %12 : vector<16x1xf32>
    %14 = vector.broadcast %13 : vector<16x1xf32> to vector<16x32xf32>
    %15 = arith.subf %9, %14 : vector<16x32xf32>
    %16 = arith.mulf %15, %15 : vector<16x32xf32>
    %cst_9 = arith.constant dense<0.000000e+00> : vector<16xf32>
    %17 = vector.multi_reduction <add>, %16, %cst_9 [1] : vector<16x32xf32> to vector<16xf32>
    %18 = vector.shape_cast %17 : vector<16xf32> to vector<16x1xf32>
    %cst_10 = arith.constant 3.200000e+01 : f32
    %19 = vector.broadcast %cst_10 : f32 to vector<16x1xf32>
    %20 = arith.divf %18, %19 : vector<16x1xf32>
    %21 = vector.broadcast %13 : vector<16x1xf32> to vector<16x32xf32>
    %22 = arith.subf %9, %21 : vector<16x32xf32>
    %cst_11 = arith.constant 9.99999974E-6 : f32
    %23 = vector.broadcast %cst_11 : f32 to vector<16x1xf32>
    %24 = arith.addf %20, %23 : vector<16x1xf32>
    %25 = math.rsqrt %24 : vector<16x1xf32>
    %26 = vector.broadcast %25 : vector<16x1xf32> to vector<16x32xf32>
    %27 = arith.mulf %22, %26 : vector<16x32xf32>
    %c0_12 = arith.constant 0 : index
    %c0_13 = arith.constant 0 : index
    %28 = vector.load %arg5[%c0_12, %c0_13] : memref<1x32xf32, #tpu.memory_space<vmem>>, vector<1x32xf32>
    %29 = vector.broadcast %28 : vector<1x32xf32> to vector<16x32xf32>
    %30 = arith.mulf %27, %29 : vector<16x32xf32>
    %c0_14 = arith.constant 0 : index
    %c0_15 = arith.constant 0 : index
    %31 = vector.load %arg6[%c0_14, %c0_15] : memref<1x32xf32, #tpu.memory_space<vmem>>, vector<1x32xf32>
    %32 = vector.broadcast %31 : vector<1x32xf32> to vector<16x32xf32>
    %33 = arith.addf %30, %32 : vector<16x32xf32>
    %c0_16 = arith.constant 0 : index
    %c0_17 = arith.constant 0 : index
    %34 = vector.load %arg7[%c0_16, %c0_17] : memref<16x32xf32, #tpu.memory_space<vmem>>, vector<16x32xf32>
    tpu.vector_store %arg7[%c0_16, %c0_17], %33 {strides = array<i32>} : memref<16x32xf32, #tpu.memory_space<vmem>>, vector<16x32xf32>,
    return
  }
  func.func @transform_0(%arg0: i32) -> (i32, i32) {
    %c0_i32 = arith.constant 0 : i32
    %c0_i32_0 = arith.constant 0 : i32
    return %arg0, %c0_i32 : i32, i32
  }
  func.func @transform_1(%arg0: i32) -> (i32, i32) {
    %c0_i32 = arith.constant 0 : i32
    %c0_i32_0 = arith.constant 0 : i32
    %c0_i32_1 = arith.constant 0 : i32
    return %c0_i32, %c0_i32_0 : i32, i32
  }
  func.func @transform_2(%arg0: i32) -> (i32, i32) {
    %c0_i32 = arith.constant 0 : i32
    %c0_i32_0 = arith.constant 0 : i32
    %c0_i32_1 = arith.constant 0 : i32
    return %c0_i32, %c0_i32_0 : i32, i32
  }
  func.func @transform_3(%arg0: i32) -> (i32, i32) {
    %c0_i32 = arith.constant 0 : i32
    %c0_i32_0 = arith.constant 0 : i32
    return %arg0, %c0_i32 : i32, i32
  }
  func.func @transform_4(%arg0: i32) -> (i32, i32) {
    %c0_i32 = arith.constant 0 : i32
    %c0_i32_0 = arith.constant 0 : i32
    %c0_i32_1 = arith.constant 0 : i32
    return %c0_i32, %c0_i32_0 : i32, i32
  }
  func.func @transform_5(%arg0: i32) -> (i32, i32) {
    %c0_i32 = arith.constant 0 : i32
    %c0_i32_0 = arith.constant 0 : i32
    %c0_i32_1 = arith.constant 0 : i32
    return %c0_i32, %c0_i32_0 : i32, i32
  }
  func.func @transform_6(%arg0: i32) -> (i32, i32) {
    %c0_i32 = arith.constant 0 : i32
    %c0_i32_0 = arith.constant 0 : i32
    return %arg0, %c0_i32 : i32, i32
  }
}

module attributes {stable_mosaic.version = 11 : i64} {
  func.func @_linear_kernel(%arg0: i32, %arg1: i32, %arg2: i32, %arg3: memref<16x32xf32, #tpu.memory_space<vmem>>, %arg4: memref<32x50xf32, #tpu.memory_space<vmem>>, %arg5: memref<1x50xf32, #tpu.memory_space<vmem>>, %arg6: memref<16x50xf32, #tpu.memory_space<vmem>>, %arg7: memref<16x50xf32, #tpu.memory_space<vmem>>) attributes {dimension_semantics = [#tpu.dimension_semantics<parallel>, #tpu.dimension_semantics<parallel>, #tpu.dimension_semantics<arbitrary>], iteration_bounds = array<i64: 1, 1, 1>, scalar_prefetch = 0 : i64, scratch_operands = 1 : i64, tpu.core_type = #tpu.core_type<tc>, window_params = [{transform_indices = @transform_0, window_bounds = array<i64: 16, 32>}, {transform_indices = @transform_1, window_bounds = array<i64: 32, 50>}, {transform_indices = @transform_2, window_bounds = array<i64: 1, 50>}, {transform_indices = @transform_3, window_bounds = array<i64: 16, 50>}]} {
    %c0_i32 = arith.constant 0 : i32
    %0 = arith.cmpi eq, %arg2, %c0_i32 : i32
    %1 = arith.extui %0 : i1 to i32
    %c0_i32_0 = arith.constant 0 : i32
    %2 = arith.cmpi ne, %1, %c0_i32_0 : i32
    scf.if %2 {
      %cst_10 = arith.constant 0.000000e+00 : f32
      %14 = vector.broadcast %cst_10 : f32 to vector<16x50xf32>
      %c0_11 = arith.constant 0 : index
      %c0_12 = arith.constant 0 : index
      %15 = vector.load %arg7[%c0_11, %c0_12] : memref<16x50xf32, #tpu.memory_space<vmem>>, vector<16x50xf32>
      tpu.vector_store %arg7[%c0_11, %c0_12], %14 {strides = array<i32>} : memref<16x50xf32, #tpu.memory_space<vmem>>, vector<16x50xf32>,
    } else {
    }
    %c0 = arith.constant 0 : index
    %c0_1 = arith.constant 0 : index
    %3 = vector.load %arg7[%c0, %c0_1] : memref<16x50xf32, #tpu.memory_space<vmem>>, vector<16x50xf32>
    %c0_2 = arith.constant 0 : index
    %c0_3 = arith.constant 0 : index
    %4 = vector.load %arg3[%c0_2, %c0_3] : memref<16x32xf32, #tpu.memory_space<vmem>>, vector<16x32xf32>
    %5 = arith.truncf %4 : vector<16x32xf32> to vector<16x32xbf16>
    %c0_4 = arith.constant 0 : index
    %c0_5 = arith.constant 0 : index
    %6 = vector.load %arg4[%c0_4, %c0_5] : memref<32x50xf32, #tpu.memory_space<vmem>>, vector<32x50xf32>
    %7 = arith.truncf %6 : vector<32x50xf32> to vector<32x50xbf16>
    %cst = arith.constant dense<0.000000e+00> : vector<16x50xf32>
    %8 = tpu.matmul %5, %7, %cst {dimension_numbers = #tpu.dot_dimension_numbers<[1], [0], [0], [1], [0, 0, 1, 1], [], []>} : vector<16x32xbf16>, vector<32x50xbf16>, vector<16x50xf32> -> vector<16x50xf32>
    %9 = arith.addf %3, %8 : vector<16x50xf32>
    %c0_6 = arith.constant 0 : index
    %c0_7 = arith.constant 0 : index
    %10 = vector.load %arg7[%c0_6, %c0_7] : memref<16x50xf32, #tpu.memory_space<vmem>>, vector<16x50xf32>
    tpu.vector_store %arg7[%c0_6, %c0_7], %9 {strides = array<i32>} : memref<16x50xf32, #tpu.memory_space<vmem>>, vector<16x50xf32>,
    %c0_i32_8 = arith.constant 0 : i32
    %11 = arith.cmpi eq, %arg2, %c0_i32_8 : i32
    %12 = arith.extui %11 : i1 to i32
    %c0_i32_9 = arith.constant 0 : i32
    %13 = arith.cmpi ne, %12, %c0_i32_9 : i32
    scf.if %13 {
      %c0_10 = arith.constant 0 : index
      %c0_11 = arith.constant 0 : index
      %14 = vector.load %arg7[%c0_10, %c0_11] : memref<16x50xf32, #tpu.memory_space<vmem>>, vector<16x50xf32>
      %c0_12 = arith.constant 0 : index
      %c0_13 = arith.constant 0 : index
      %15 = vector.load %arg5[%c0_12, %c0_13] : memref<1x50xf32, #tpu.memory_space<vmem>>, vector<1x50xf32>
      %16 = vector.broadcast %15 : vector<1x50xf32> to vector<16x50xf32>
      %17 = arith.addf %14, %16 : vector<16x50xf32>
      %c0_14 = arith.constant 0 : index
      %c0_15 = arith.constant 0 : index
      %18 = vector.load %arg6[%c0_14, %c0_15] : memref<16x50xf32, #tpu.memory_space<vmem>>, vector<16x50xf32>
      tpu.vector_store %arg6[%c0_14, %c0_15], %17 {strides = array<i32>} : memref<16x50xf32, #tpu.memory_space<vmem>>, vector<16x50xf32>,
    } else {
    }
    return
  }
  func.func @transform_0(%arg0: i32, %arg1: i32, %arg2: i32) -> (i32, i32) {
    %c0_i32 = arith.constant 0 : i32
    return %arg0, %arg2 : i32, i32
  }
  func.func @transform_1(%arg0: i32, %arg1: i32, %arg2: i32) -> (i32, i32) {
    %c0_i32 = arith.constant 0 : i32
    return %arg2, %arg1 : i32, i32
  }
  func.func @transform_2(%arg0: i32, %arg1: i32, %arg2: i32) -> (i32, i32) {
    %c0_i32 = arith.constant 0 : i32
    %c0_i32_0 = arith.constant 0 : i32
    return %c0_i32, %arg1 : i32, i32
  }
  func.func @transform_3(%arg0: i32, %arg1: i32, %arg2: i32) -> (i32, i32) {
    %c0_i32 = arith.constant 0 : i32
    return %arg0, %arg1 : i32, i32
  }
}

module attributes {stable_mosaic.version = 11 : i64} {
  func.func @_ffn_add_ln_kernel(%arg0: i32, %arg1: memref<16x32xf32, #tpu.memory_space<vmem>>, %arg2: memref<32x64xf32, #tpu.memory_space<vmem>>, %arg3: memref<1x64xf32, #tpu.memory_space<vmem>>, %arg4: memref<64x32xf32, #tpu.memory_space<vmem>>, %arg5: memref<1x32xf32, #tpu.memory_space<vmem>>, %arg6: memref<1x32xf32, #tpu.memory_space<vmem>>, %arg7: memref<1x32xf32, #tpu.memory_space<vmem>>, %arg8: memref<16x32xf32, #tpu.memory_space<vmem>>) attributes {dimension_semantics = [#tpu.dimension_semantics<parallel>], iteration_bounds = array<i64: 1>, scalar_prefetch = 0 : i64, scratch_operands = 0 : i64, tpu.core_type = #tpu.core_type<tc>, window_params = [{transform_indices = @transform_0, window_bounds = array<i64: 16, 32>}, {pipeline_mode = #tpu.pipeline_mode<synchronous>, transform_indices = @transform_1, window_bounds = array<i64: 32, 64>}, {pipeline_mode = #tpu.pipeline_mode<synchronous>, transform_indices = @transform_2, window_bounds = array<i64: 1, 64>}, {pipeline_mode = #tpu.pipeline_mode<synchronous>, transform_indices = @transform_3, window_bounds = array<i64: 64, 32>}, {pipeline_mode = #tpu.pipeline_mode<synchronous>, transform_indices = @transform_4, window_bounds = array<i64: 1, 32>}, {pipeline_mode = #tpu.pipeline_mode<synchronous>, transform_indices = @transform_5, window_bounds = array<i64: 1, 32>}, {pipeline_mode = #tpu.pipeline_mode<synchronous>, transform_indices = @transform_6, window_bounds = array<i64: 1, 32>}, {transform_indices = @transform_7, window_bounds = array<i64: 16, 32>}]} {
    %c0 = arith.constant 0 : index
    %c0_0 = arith.constant 0 : index
    %0 = vector.load %arg1[%c0, %c0_0] : memref<16x32xf32, #tpu.memory_space<vmem>>, vector<16x32xf32>
    %1 = arith.truncf %0 : vector<16x32xf32> to vector<16x32xbf16>
    %c0_1 = arith.constant 0 : index
    %c0_2 = arith.constant 0 : index
    %2 = vector.load %arg2[%c0_1, %c0_2] : memref<32x64xf32, #tpu.memory_space<vmem>>, vector<32x64xf32>
    %3 = arith.truncf %2 : vector<32x64xf32> to vector<32x64xbf16>
    %cst = arith.constant dense<0.000000e+00> : vector<16x64xf32>
    %4 = tpu.matmul %1, %3, %cst {dimension_numbers = #tpu.dot_dimension_numbers<[1], [0], [0], [1], [0, 0, 1, 1], [], []>} : vector<16x32xbf16>, vector<32x64xbf16>, vector<16x64xf32> -> vector<16x64xf32>
    %c0_3 = arith.constant 0 : index
    %c0_4 = arith.constant 0 : index
    %5 = vector.load %arg3[%c0_3, %c0_4] : memref<1x64xf32, #tpu.memory_space<vmem>>, vector<1x64xf32>
    %6 = vector.broadcast %5 : vector<1x64xf32> to vector<16x64xf32>
    %7 = arith.addf %4, %6 : vector<16x64xf32>
    %cst_5 = arith.constant 0.000000e+00 : f32
    %8 = vector.broadcast %cst_5 : f32 to vector<16x64xf32>
    %9 = arith.maximumf %7, %8 : vector<16x64xf32>
    %10 = arith.truncf %9 : vector<16x64xf32> to vector<16x64xbf16>
    %c0_6 = arith.constant 0 : index
    %c0_7 = arith.constant 0 : index
    %11 = vector.load %arg4[%c0_6, %c0_7] : memref<64x32xf32, #tpu.memory_space<vmem>>, vector<64x32xf32>
    %12 = arith.truncf %11 : vector<64x32xf32> to vector<64x32xbf16>
    %cst_8 = arith.constant dense<0.000000e+00> : vector<16x32xf32>
    %13 = tpu.matmul %10, %12, %cst_8 {dimension_numbers = #tpu.dot_dimension_numbers<[1], [0], [0], [1], [0, 0, 1, 1], [], []>} : vector<16x64xbf16>, vector<64x32xbf16>, vector<16x32xf32> -> vector<16x32xf32>
    %c0_9 = arith.constant 0 : index
    %c0_10 = arith.constant 0 : index
    %14 = vector.load %arg5[%c0_9, %c0_10] : memref<1x32xf32, #tpu.memory_space<vmem>>, vector<1x32xf32>
    %15 = vector.broadcast %14 : vector<1x32xf32> to vector<16x32xf32>
    %16 = arith.addf %13, %15 : vector<16x32xf32>
    %17 = arith.addf %0, %16 : vector<16x32xf32>
    %cst_11 = arith.constant dense<0.000000e+00> : vector<16xf32>
    %18 = vector.multi_reduction <add>, %17, %cst_11 [1] : vector<16x32xf32> to vector<16xf32>
    %19 = vector.shape_cast %18 : vector<16xf32> to vector<16x1xf32>
    %cst_12 = arith.constant 3.200000e+01 : f32
    %20 = vector.broadcast %cst_12 : f32 to vector<16x1xf32>
    %21 = arith.divf %19, %20 : vector<16x1xf32>
    %22 = vector.broadcast %21 : vector<16x1xf32> to vector<16x32xf32>
    %23 = arith.subf %17, %22 : vector<16x32xf32>
    %24 = arith.mulf %23, %23 : vector<16x32xf32>
    %cst_13 = arith.constant dense<0.000000e+00> : vector<16xf32>
    %25 = vector.multi_reduction <add>, %24, %cst_13 [1] : vector<16x32xf32> to vector<16xf32>
    %26 = vector.shape_cast %25 : vector<16xf32> to vector<16x1xf32>
    %cst_14 = arith.constant 3.200000e+01 : f32
    %27 = vector.broadcast %cst_14 : f32 to vector<16x1xf32>
    %28 = arith.divf %26, %27 : vector<16x1xf32>
    %29 = vector.broadcast %21 : vector<16x1xf32> to vector<16x32xf32>
    %30 = arith.subf %17, %29 : vector<16x32xf32>
    %cst_15 = arith.constant 9.99999974E-6 : f32
    %31 = vector.broadcast %cst_15 : f32 to vector<16x1xf32>
    %32 = arith.addf %28, %31 : vector<16x1xf32>
    %33 = math.rsqrt %32 : vector<16x1xf32>
    %34 = vector.broadcast %33 : vector<16x1xf32> to vector<16x32xf32>
    %35 = arith.mulf %30, %34 : vector<16x32xf32>
    %c0_16 = arith.constant 0 : index
    %c0_17 = arith.constant 0 : index
    %36 = vector.load %arg6[%c0_16, %c0_17] : memref<1x32xf32, #tpu.memory_space<vmem>>, vector<1x32xf32>
    %37 = vector.broadcast %36 : vector<1x32xf32> to vector<16x32xf32>
    %38 = arith.mulf %35, %37 : vector<16x32xf32>
    %c0_18 = arith.constant 0 : index
    %c0_19 = arith.constant 0 : index
    %39 = vector.load %arg7[%c0_18, %c0_19] : memref<1x32xf32, #tpu.memory_space<vmem>>, vector<1x32xf32>
    %40 = vector.broadcast %39 : vector<1x32xf32> to vector<16x32xf32>
    %41 = arith.addf %38, %40 : vector<16x32xf32>
    %c0_20 = arith.constant 0 : index
    %c0_21 = arith.constant 0 : index
    %42 = vector.load %arg8[%c0_20, %c0_21] : memref<16x32xf32, #tpu.memory_space<vmem>>, vector<16x32xf32>
    tpu.vector_store %arg8[%c0_20, %c0_21], %41 {strides = array<i32>} : memref<16x32xf32, #tpu.memory_space<vmem>>, vector<16x32xf32>,
    return
  }
  func.func @transform_0(%arg0: i32) -> (i32, i32) {
    %c0_i32 = arith.constant 0 : i32
    %c0_i32_0 = arith.constant 0 : i32
    return %arg0, %c0_i32 : i32, i32
  }
  func.func @transform_1(%arg0: i32) -> (i32, i32) {
    %c0_i32 = arith.constant 0 : i32
    %c0_i32_0 = arith.constant 0 : i32
    %c0_i32_1 = arith.constant 0 : i32
    return %c0_i32, %c0_i32_0 : i32, i32
  }
  func.func @transform_2(%arg0: i32) -> (i32, i32) {
    %c0_i32 = arith.constant 0 : i32
    %c0_i32_0 = arith.constant 0 : i32
    %c0_i32_1 = arith.constant 0 : i32
    return %c0_i32, %c0_i32_0 : i32, i32
  }
  func.func @transform_3(%arg0: i32) -> (i32, i32) {
    %c0_i32 = arith.constant 0 : i32
    %c0_i32_0 = arith.constant 0 : i32
    %c0_i32_1 = arith.constant 0 : i32
    return %c0_i32, %c0_i32_0 : i32, i32
  }
  func.func @transform_4(%arg0: i32) -> (i32, i32) {
    %c0_i32 = arith.constant 0 : i32
    %c0_i32_0 = arith.constant 0 : i32
    %c0_i32_1 = arith.constant 0 : i32
    return %c0_i32, %c0_i32_0 : i32, i32
  }
  func.func @transform_5(%arg0: i32) -> (i32, i32) {
    %c0_i32 = arith.constant 0 : i32
    %c0_i32_0 = arith.constant 0 : i32
    %c0_i32_1 = arith.constant 0 : i32
    return %c0_i32, %c0_i32_0 : i32, i32
  }
  func.func @transform_6(%arg0: i32) -> (i32, i32) {
    %c0_i32 = arith.constant 0 : i32
    %c0_i32_0 = arith.constant 0 : i32
    %c0_i32_1 = arith.constant 0 : i32
    return %c0_i32, %c0_i32_0 : i32, i32
  }
  func.func @transform_7(%arg0: i32) -> (i32, i32) {
    %c0_i32 = arith.constant 0 : i32
    %c0_i32_0 = arith.constant 0 : i32
    return %arg0, %c0_i32 : i32, i32
  }
}

</mosaic_0001>

<bundles_post_ra>
// kernel: forward.29
= control target key start
LH: loop header
LB: loop body
LE: loop exit
PB: predicated region body
PF: predicated region fallthrough
CT: control target
= control target key end

     0   :  { %vm19_vm0 = vcmask 261120   ;;  %v117_v0 = vmov 0.0   ;;  %vm118_vm1 = vmmov 0   ;;  %s173_s1 = inlined_call_operand.vmem [shape: f32[32,32], index: 1, kind: input, shape index: {}]   ;;  %s174_s0 = inlined_call_operand.vmem [shape: f32[16,32], index: 0, kind: input, shape index: {}]   ;;  %s175_s2 = inlined_call_operand.vmem [shape: f32[1,32], index: 2, kind: input, shape index: {}]   ;;  %s176_s3 = inlined_call_operand.vmem [shape: f32[16,32], index: 3, kind: output, shape index: {}]  }
   0x1   :  { %107 = vmatprep.subr.bf16.mxu0 %v117_v0  ;;  %v27_v1 = vld [vmem:[%s173_s1] sm:$0xff]  ;;  %v28_v2 = vld [vmem:[%s173_s1 + $0x8] sm:$0xff]  ;;  %v29_v3 = vld [vmem:[%s173_s1 + $0x10] sm:$0xff]  ;;  %111 = vmatprep.mubr.msk.bf16.mxu0 %vm118_vm1, %v117_v0  ;;  %20 = vst.msk [vmem:[#allocation2] sm:$0xff] %vm19_vm0, %v117_v0 }
   0x2   :  { %21 = vst.msk [vmem:[#allocation2 + $0x8] sm:$0xff] %vm19_vm0, %v117_v0  ;;  %v31_v4 = vpack.c.bf16 %v28_v2, %v27_v1  ;;  %v30_v5 = vld [vmem:[%s173_s1 + $0x18] sm:$0xff]  ;;  %v24_v7 = vld [vmem:[%s174_s0] sm:$0xff]  ;;  %v25_v8 = vld [vmem:[%s174_s0 + $0x8] sm:$0xff] }
   0x3   :  { %v32_v6 = vpack.c.bf16 %v30_v5, %v29_v3  ;;  %v26_v9 = vpack.c.bf16 %v25_v8, %v24_v7  ;;  %v103_v18 = vld [vmem:[%s175_s2] ss:$0 sm:$0xff] }
   0x4   :  { %108 = vmatpush3.bf16.msra.mxu0 %v31_v4 }
   0x5   :  { %109 = vmatprep.subr.bf16.mxu0 %v117_v0 }
   0x8   :  { %110 = vmatpush3.bf16.msra.mxu0 %v32_v6  ;;  %v22_v10 = vld [vmem:[#allocation2] sm:$0xff] }
   0x9   :  { %v23_v12 = vld [vmem:[#allocation2 + $0x8] sm:$0xff] }
   0xb   :  { %112 = vmatmul.mubr.msk.bf16.vlgmr.msra.gmra.mrb[0].mxu0 %vm19_vm0, %v26_v9 }
  0xde   :  { %v71_v11 = vpop.f32.mrb[0].mxu0 }
  0xdf   :  { %v78_v13 = vadd.f32 %v71_v11, %v22_v10  ;;  %v113_v14 = vpop.f32.mrb[1].mxu0 }
  0xe0   :  { %v74_v15 = vpop.f32.mrb[2].mxu0 }
  0xe1   :  { %80 = vst.msk [vmem:[#allocation2] sm:$0xff] %vm19_vm0, %v78_v13  ;;  %v79_v16 = vadd.f32 %v74_v15, %v23_v12  ;;  %v114_v17 = vpop.f32.mrb[3].mxu0 }
  0xe3   :  { %81 = vst.msk [vmem:[#allocation2 + $0x8] sm:$0xff] %vm19_vm0, %v79_v16 }
  0xe8   :  { %v85_v19 = vld [vmem:[#allocation2] sm:$0xff] }
  0xe9   :  { %v94_v20 = vadd.f32 %v103_v18, %v85_v19 }
  0xea   :  { %v86_v21 = vld [vmem:[#allocation2 + $0x8] sm:$0xff] }
  0xeb   :  { %96 = vst.msk [vmem:[%s176_s3] sm:$0xff] %vm19_vm0, %v94_v20  ;;  %v95_v22 = vadd.f32 %v103_v18, %v86_v21 }
  0xed   :  { %97 = vst.msk [vmem:[%s176_s3 + $0x8] sm:$0xff] %vm19_vm0, %v95_v22 }

// kernel: forward.30
= control target key start
LH: loop header
LB: loop body
LE: loop exit
PB: predicated region body
PF: predicated region fallthrough
CT: control target
= control target key end

     0   :  { %vm19_vm0 = vcmask 523264   ;;  %v118_v0 = vmov 0.0   ;;  %vm119_vm1 = vmmov 0   ;;  %vm33_vm2 = vcmask 261120   ;;  %s173_s1 = inlined_call_operand.vmem [shape: f32[32,64], index: 1, kind: input, shape index: {}]   ;;  %s174_s0 = inlined_call_operand.vmem [shape: f32[16,32], index: 0, kind: input, shape index: {}]   ;;  %s175_s2 = inlined_call_operand.vmem [shape: f32[1,64], index: 2, kind: input, shape index: {}]   ;;  %s176_s3 = inlined_call_operand.vmem [shape: f32[16,64], index: 3, kind: output, shape index: {}]  }
   0x1   :  { %108 = vmatprep.subr.bf16.mxu0 %v118_v0  ;;  %v27_v1 = vld [vmem:[%s173_s1] sm:$0xff]  ;;  %v28_v2 = vld [vmem:[%s173_s1 + $0x8] sm:$0xff]  ;;  %v29_v3 = vld [vmem:[%s173_s1 + $0x10] sm:$0xff]  ;;  %112 = vmatprep.mubr.msk.bf16.mxu0 %vm119_vm1, %v118_v0  ;;  %20 = vst.msk [vmem:[#allocation2] sm:$0xff] %vm19_vm0, %v118_v0 }
   0x2   :  { %21 = vst.msk [vmem:[#allocation2 + $0x8] sm:$0xff] %vm19_vm0, %v118_v0  ;;  %v31_v4 = vpack.c.bf16 %v28_v2, %v27_v1  ;;  %v30_v5 = vld [vmem:[%s173_s1 + $0x18] sm:$0xff]  ;;  %v24_v7 = vld [vmem:[%s174_s0] sm:$0xff]  ;;  %v25_v8 = vld [vmem:[%s174_s0 + $0x8] sm:$0xff] }
   0x3   :  { %v32_v6 = vpack.c.bf16 %v30_v5, %v29_v3  ;;  %v26_v9 = vpack.c.bf16 %v25_v8, %v24_v7  ;;  %v104_v18 = vld [vmem:[%s175_s2] ss:$0 sm:$0xff] }
   0x4   :  { %109 = vmatpush3.bf16.msra.mxu0 %v31_v4 }
   0x5   :  { %110 = vmatprep.subr.bf16.mxu0 %v118_v0 }
   0x8   :  { %111 = vmatpush3.bf16.msra.mxu0 %v32_v6  ;;  %v22_v10 = vld [vmem:[#allocation2] sm:$0xff] }
   0x9   :  { %v23_v12 = vld [vmem:[#allocation2 + $0x8] sm:$0xff] }
   0xb   :  { %113 = vmatmul.mubr.msk.bf16.vlgmr.msra.gmra.mrb[0].mxu0 %vm33_vm2, %v26_v9 }
  0xde   :  { %v71_v11 = vpop.f32.mrb[0].mxu0 }
  0xdf   :  { %v78_v13 = vadd.f32 %v71_v11, %v22_v10  ;;  %v114_v14 = vpop.f32.mrb[1].mxu0 }
  0xe0   :  { %v74_v15 = vpop.f32.mrb[2].mxu0 }
  0xe1   :  { %81 = vst.msk [vmem:[#allocation2] sm:$0xff] %vm19_vm0, %v78_v13  ;;  %v79_v16 = vadd.f32 %v74_v15, %v23_v12  ;;  %v115_v17 = vpop.f32.mrb[3].mxu0 }
  0xe3   :  { %82 = vst.msk [vmem:[#allocation2 + $0x8] sm:$0xff] %vm19_vm0, %v79_v16 }
  0xe8   :  { %v86_v19 = vld [vmem:[#allocation2] sm:$0xff] }
  0xe9   :  { %v95_v20 = vadd.f32 %v104_v18, %v86_v19 }
  0xea   :  { %v87_v21 = vld [vmem:[#allocation2 + $0x8] sm:$0xff] }
  0xeb   :  { %97 = vst.msk [vmem:[%s176_s3] sm:$0xff] %vm19_vm0, %v95_v20  ;;  %v96_v22 = vadd.f32 %v104_v18, %v87_v21 }
  0xed   :  { %98 = vst.msk [vmem:[%s176_s3 + $0x8] sm:$0xff] %vm19_vm0, %v96_v22 }

// kernel: forward.31
= control target key start
LH: loop header
LB: loop body
LE: loop exit
PB: predicated region body
PF: predicated region fallthrough
CT: control target
= control target key end

     0   :  { %s907_s12 = smov 0   ;;  %s1009_s0 = inlined_call_operand.vmem [shape: f32[2,8,32], index: 0, kind: input, shape index: {}]   ;;  %s1010_s1 = inlined_call_operand.vmem [shape: f32[2,8,64], index: 1, kind: input, shape index: {}]   ;;  %s1011_s2 = inlined_call_operand.vmem [shape: f32[2,8,8], index: 2, kind: input, shape index: {}]   ;;  %s1012_s3 = inlined_call_operand.vmem [shape: f32[2,8,32], index: 3, kind: output, shape index: {}]  }
   0x1 LB: > { %s748_s13 = sadd.s32 4294967295, %s873_s12   ;;  %p752_p0 = scmp.ge.s32.totalorder %s873_s12, 1  ;;  %s873_s12 = sphi %s907_s12, %s13_s12  }
   0x2   : > { %p154_p1 = scmp.lt.s32.totalorder %s873_s12, 3 }
   0x4   : > { %p155_p2 = pnand %p752_p0, %p154_p1 }
   0x5   : > { %p184_p3 = scmp.lt.s32.totalorder (!%p155_p2), %s748_s13, 1  ;;  %v875_v0 = vmov (!%p155_p2), 0.0   ;;  %vm876_vm0 = vmmov (!%p155_p2), 0   ;;  %vm207_vm1 = vcmask (!%p155_p2), 64512   ;;  %s877_s24 = smov (!%p155_p2), 96   ;;  %vm274_vm3 = vcmask (!%p155_p2), 1043456  }
   0x6   : > { %158 = sbr.rel (%p155_p2) target bundleno = 1439 (0x59f), region = 32  ;;  %783 = vmatprep.subr.bf16.mxu0 (!%p155_p2), %v875_v0  ;;  %785 = vmatprep.mubr.msk.bf16.mxu0 (!%p155_p2), %vm876_vm0, %v875_v0  ;;  %s878_s25 = smov (!%p155_p2), 120   ;;  %vm665_vm4 = vcmask (!%p155_p2), 130048   ;;  %vm667_vm5 = vcmask (!%p155_p2), 195584   ;;  %vm669_vm6 = vcmask (!%p155_p2), 261120  }
   0x7   : > { %789 = vmatprep.subr.bf16.mxu1 (!%p155_p2), %v875_v0  ;;  %791 = vmatprep.mubr.msk.bf16.mxu1 (!%p155_p2), %vm876_vm0, %v875_v0  ;;  %s879_s26 = smov (!%p155_p2), 112   ;;  %s880_s27 = smov (!%p155_p2), 104  }
   0x8   : > { %s881_s28 = smov (!%p155_p2), 88   ;;  %s882_s29 = smov (!%p155_p2), 72  }
   0x9   : > { %s883_s30 = smov (!%p155_p2), 80   ;;  %s884_s4 = smov (!%p155_p2), 8  }
   0xa   : > { %s885_s5 = smov (!%p155_p2), 16   ;;  %s886_s6 = smov (!%p155_p2), 24  }
   0xd   : > { %s1014_s13 = smov (!%p184_p3, %s748_s13), 1 }
   0xe   : > { %s921_s14 = sshll.u32 %s1014_s13, 3 }
   0xf   : > { %s191_s17 = scalar_lea.vmem %s1010_s1, %s921_s14  ;;  %s187_s20 = scalar_lea.vmem %s1009_s0, %s921_s14 }
  0x10   : > { %v203_v1 = vld [vmem:[%s191_s17] sm:$0xff]  ;;  %s195_s23 = scalar_lea.vmem %s1011_s2, %s921_s14  ;;  %s199_s9 = scalar_lea.vmem %s1012_s3, %s921_s14 }
  0x11   : > { %v201_v2 = vld [vmem:[%s187_s20] sm:$0xff]  ;;  %v931_v3 = vpack.c.bf16 %v203_v1, %v203_v1 }
  0x12   : > { %v202_v5 = vmul.f32 0.35355338, %v201_v2  ;;  %v943_v7 = vld [vmem:[%s195_s23] sm:$0xff] }
  0x13   : > { %v212_v4 = vsel %vm207_vm1, %v931_v3, 0  ;;  %vm254_vm2 = vcmp.gt.f32.partialorder %v943_v7, 0.0  ;;  %269 = vrot.lane.b32.xlu1 %v931_v3, %s877_s24 }
  0x14   : > { %784 = vmatpush3.bf16.xpose.msra.mxu0 %v212_v4  ;;  %v205_v6 = vpack.c.bf16 %v202_v5, %v202_v5 }
  0x15   : > { %801 = vmatprep.subr.bf16.mxu0 %v875_v0 }
  0x17   : > { %321 = vrot.lane.b32.xlu1 %v931_v3, %s878_s25 }
  0x1b   : > { %786 = vmatmul.mubr.msk.bf16.vlgmr.msra.gmra.mrb[0].mxu0 %vm207_vm1, %v205_v6  ;;  %432 = vrot.lane.b32.xlu1 %v931_v3, %s879_s26 }
  0x1c   : > { %803 = vmatprep.mubr.msk.bf16.mxu0 %vm876_vm0, %v875_v0 }
  0x1f   : > { %430 = vrot.lane.b32.xlu1 %v205_v6, %s879_s26 }
  0x23   : > { %543 = vrot.lane.b32.xlu1 %v931_v3, %s880_s27 }
  0x27   : > { %541 = vrot.lane.b32.xlu1 %v205_v6, %s880_s27 }
  0x85   : > { %v270_v19 = vpop.permute.xlu1 %269 }
  0x86   : > { %v276_v20 = vsel %vm274_vm3, %v270_v19, 0 }
  0x87   : > { %790 = vmatpush3.bf16.msra.mxu1 %v276_v20 }
  0x88   : > { %795 = vmatprep.subr.bf16.mxu1 %v875_v0 }
  0x89   : > { %v322_v23 = vpop.permute.xlu1 %321 }
  0x8a   : > { %v327_v25 = vsel %vm207_vm1, %v322_v23, 0 }
  0x8d   : > { %v433_v27 = vpop.permute.xlu1 %432 }
  0x8e   : > { %v438_v30 = vsel %vm207_vm1, %v433_v27, 0 }
  0x91   : > { %v431_v29 = vpop.permute.xlu1 %430 }
  0x95   : > { %v544_v31 = vpop.permute.xlu1 %543 }
  0x96   : > { %v549_v32 = vsel %vm207_vm1, %v544_v31, 0 }
  0x99   : > { %v542_v33 = vpop.permute.xlu1 %541 }
  0xee   : > { %v248_v8 = vpop.f32.mrb[0].mxu0 }
  0xef   : > { %v255_v9 = vsel %vm254_vm2, %v248_v8, -1e+09  ;;  %v787_v10 = vpop.f32.mrb[1].mxu0 }
  0xf0   : > { %v251_v11 = vpop.f32.mrb[2].mxu0  ;;  %v256_v12 = vsel %vm207_vm1, %v255_v9, -inf }
  0xf1   : > { %257 = vmax.xlane.f32.xlu0 %v256_v12  ;;  %v788_v13 = vpop.f32.mrb[3].mxu0 }
 0x17e   : > { %v258_v14 = vpop.xlane.xlu0 %257 }
 0x17f   : > { %v259_v15 = vsub.f32 %v255_v9, %v258_v14 }
 0x181   : > { %v260_v16 = vmul.f32 1.442695, %v259_v15 }
 0x183   : > { %851 = vpow2.f32 %v260_v16 }
 0x18d   : > { %v852_v17 = vpop.eup %851 }
 0x18e   : > { %v262_v18 = vsel %vm207_vm1, %v852_v17, 0.0 }
 0x18f   : > { %263 = vadd.xlane.f32.xlu0 %v262_v18 }
 0x1a5   : > { %319 = vrot.lane.b32.xlu0 %v205_v6, %s878_s25 }
 0x21c   : > { %v264_v21 = vpop.xlane.xlu0 %263 }
 0x21d   : > { %853 = vrcp.f32 %v264_v21 }
 0x220   : > { %v320_v28 = vpop.permute.xlu0 %319 }
 0x227   : > { %v854_v22 = vpop.eup %853 }
 0x228   : > { %v266_v24 = vmul.f32 %v854_v22, %v852_v17 }
 0x22a   : > { %v267_v26 = vpack.c.bf16 %v266_v24, %v266_v24 }
 0x22c   : > { %792 = vmatmul.mubr.msk.bf16.vlgmr.msra.gmra.mrb[0].mxu1 %vm207_vm1, %v267_v26 }
 0x22d   : > { %796 = vmatpush3.bf16.xpose.msra.mxu1 %v327_v25  ;;  %797 = vmatprep.mubr.msk.bf16.mxu1 %vm876_vm0, %v875_v0 }
 0x22e   : > { %807 = vmatprep.subr.bf16.mxu1 %v875_v0 }
 0x234   : > { %798 = vmatmul.mubr.msk.bf16.vlgmr.msra.gmra.mrb[4].mxu1 %vm207_vm1, %v320_v28 }
 0x235   : > { %808 = vmatpush3.bf16.xpose.msra.mxu1 %v438_v30  ;;  %809 = vmatprep.mubr.msk.bf16.mxu1 %vm876_vm0, %v875_v0 }
 0x236   : > { %819 = vmatprep.subr.bf16.mxu1 %v875_v0 }
 0x23c   : > { %810 = vmatmul.mubr.msk.bf16.vlgmr.msra.gmra.mrb[8].mxu1 %vm207_vm1, %v431_v29 }
 0x23d   : > { %820 = vmatpush3.bf16.xpose.msra.mxu1 %v549_v32  ;;  %821 = vmatprep.mubr.msk.bf16.mxu1 %vm876_vm0, %v875_v0 }
 0x244   : > { %822 = vmatmul.mubr.msk.bf16.vlgmr.msra.gmra.mrb[12].mxu1 %vm207_vm1, %v542_v33 }
 0x2ff   : > { %v971_v34 = vpop.f32.mrb[0].mxu1 }
 0x300   : > { %v793_v35 = vpop.f32.mrb[1].mxu1 }
 0x301   : > { %v315_v36 = vpop.f32.mrb[2].mxu1 }
 0x302   : > { %v794_v37 = vpop.f32.mrb[3].mxu1 }
 0x307   : > { %v363_v38 = vpop.f32.mrb[4].mxu1 }
 0x308   : > { %v369_v39 = vsel %vm254_vm2, %v363_v38, -1e+09  ;;  %v799_v40 = vpop.f32.mrb[5].mxu1 }
 0x309   : > { %v366_v41 = vpop.f32.mrb[6].mxu1  ;;  %v370_v42 = vsel %vm207_vm1, %v369_v39, -inf }
 0x30a   : > { %371 = vmax.xlane.f32.xlu1 %v370_v42  ;;  %v800_v43 = vpop.f32.mrb[7].mxu1 }
 0x30f   : > { %v474_v44 = vpop.f32.mrb[8].mxu1 }
 0x310   : > { %v480_v45 = vsel %vm254_vm2, %v474_v44, -1e+09  ;;  %v811_v46 = vpop.f32.mrb[9].mxu1 }
 0x311   : > { %v477_v47 = vpop.f32.mrb[10].mxu1  ;;  %v481_v48 = vsel %vm207_vm1, %v480_v45, -inf }
 0x312   : > { %482 = vmax.xlane.f32.xlu0 %v481_v48  ;;  %v812_v49 = vpop.f32.mrb[11].mxu1 }
 0x317   : > { %v585_v50 = vpop.f32.mrb[12].mxu1 }
 0x318   : > { %v591_v51 = vsel %vm254_vm2, %v585_v50, -1e+09  ;;  %v823_v52 = vpop.f32.mrb[13].mxu1 }
 0x319   : > { %v588_v53 = vpop.f32.mrb[14].mxu1  ;;  %v592_v54 = vsel %vm207_vm1, %v591_v51, -inf }
 0x31a   : > { %593 = vmax.xlane.f32.xlu1 %v592_v54  ;;  %v824_v55 = vpop.f32.mrb[15].mxu1 }
 0x32b   : > { %382 = vrot.lane.b32.xlu1 %v931_v3, %s881_s28 }
 0x397   : > { %v372_v56 = vpop.xlane.xlu1 %371 }
 0x398   : > { %v373_v57 = vsub.f32 %v369_v39, %v372_v56 }
 0x39a   : > { %v374_v58 = vmul.f32 1.442695, %v373_v57 }
 0x39c   : > { %855 = vpow2.f32 %v374_v58 }
 0x39f   : > { %v483_v59 = vpop.xlane.xlu0 %482 }
 0x3a0   : > { %v484_v60 = vsub.f32 %v480_v45, %v483_v59 }
 0x3a2   : > { %v485_v61 = vmul.f32 1.442695, %v484_v60 }
 0x3a4   : > { %857 = vpow2.f32 %v485_v61 }
 0x3a6   : > { %v856_v62 = vpop.eup %855 }
 0x3a7   : > { %v594_v63 = vpop.xlane.xlu1 %593  ;;  %v376_v1 = vsel %vm207_vm1, %v856_v62, 0.0 }
 0x3a8   : > { %v595_v2 = vsub.f32 %v591_v51, %v594_v63  ;;  %377 = vadd.xlane.f32.xlu0 %v376_v1 }
 0x3aa   : > { %v596_v4 = vmul.f32 1.442695, %v595_v2 }
 0x3ab   : > { %v383_v5 = vpop.permute.xlu1 %382 }
 0x3ac   : > { %859 = vpow2.f32 %v596_v4  ;;  %v388_v6 = vsel %vm274_vm3, %v383_v5, 0 }
 0x3ad   : > { %802 = vmatpush3.bf16.msra.mxu0 %v388_v6 }
 0x3ae   : > { %v858_v7 = vpop.eup %857  ;;  %813 = vmatprep.subr.bf16.mxu0 %v875_v0 }
 0x3af   : > { %v487_v8 = vsel %vm207_vm1, %v858_v7, 0.0 }
 0x3b0   : > { %488 = vadd.xlane.f32.xlu1 %v487_v8 }
 0x3b6   : > { %v860_v9 = vpop.eup %859 }
 0x3b7   : > { %v598_v10 = vsel %vm207_vm1, %v860_v9, 0.0 }
 0x3b8   : > { %599 = vadd.xlane.f32.xlu0 %v598_v10 }
 0x3c1   : > { %604 = vrot.lane.b32.xlu1 %v931_v3, %s882_s29 }
 0x3ce   : > { %493 = vrot.lane.b32.xlu0 %v931_v3, %s883_s30 }
 0x435   : > { %v378_v11 = vpop.xlane.xlu0 %377 }
 0x436   : > { %861 = vrcp.f32 %v378_v11 }
 0x43d   : > { %v489_v12 = vpop.xlane.xlu1 %488 }
 0x43e   : > { %863 = vrcp.f32 %v489_v12 }
 0x440   : > { %v862_v13 = vpop.eup %861 }
 0x441   : > { %v380_v14 = vmul.f32 %v862_v13, %v856_v62  ;;  %v605_v20 = vpop.permute.xlu1 %604 }
 0x442   : > { %v610_v22 = vsel %vm274_vm3, %v605_v20, 0 }
 0x443   : > { %v381_v15 = vpack.c.bf16 %v380_v14, %v380_v14 }
 0x445   : > { %v600_v16 = vpop.xlane.xlu0 %599  ;;  %804 = vmatmul.mubr.msk.bf16.vlgmr.msra.gmra.mrb[4].mxu0 %vm207_vm1, %v381_v15 }
 0x446   : > { %865 = vrcp.f32 %v600_v16  ;;  %815 = vmatprep.mubr.msk.bf16.mxu0 %vm876_vm0, %v875_v0 }
 0x448   : > { %v864_v17 = vpop.eup %863 }
 0x449   : > { %v491_v18 = vmul.f32 %v864_v17, %v858_v7  ;;  %v494_v19 = vpop.permute.xlu0 %493 }
 0x44a   : > { %v499_v3 = vsel %vm274_vm3, %v494_v19, 0 }
 0x44b   : > { %814 = vmatpush3.bf16.msra.mxu0 %v499_v3  ;;  %v492_v21 = vpack.c.bf16 %v491_v18, %v491_v18 }
 0x44c   : > { %825 = vmatprep.subr.bf16.mxu0 %v875_v0 }
 0x44e   : > { %816 = vmatmul.mubr.msk.bf16.vlgmr.msra.gmra.mrb[8].mxu0 %vm207_vm1, %v492_v21 }
 0x44f   : > { %826 = vmatpush3.bf16.msra.mxu0 %v610_v22  ;;  %827 = vmatprep.mubr.msk.bf16.mxu0 %vm876_vm0, %v875_v0 }
 0x450   : > { %v866_v23 = vpop.eup %865 }
 0x451   : > { %v602_v24 = vmul.f32 %v866_v23, %v860_v9 }
 0x453   : > { %v603_v25 = vpack.c.bf16 %v602_v24, %v602_v24 }
 0x456   : > { %828 = vmatmul.mubr.msk.bf16.vlgmr.msra.gmra.mrb[12].mxu0 %vm207_vm1, %v603_v25 }
 0x518   : > { %v424_v26 = vpop.f32.mrb[4].mxu0 }
 0x519   : > { %653 = vrot.lane.b32.xlu1 %v424_v26, %s884_s4  ;;  %v805_v27 = vpop.f32.mrb[5].mxu0 }
 0x51a   : > { %v427_v28 = vpop.f32.mrb[6].mxu0 }
 0x51b   : > { %v806_v29 = vpop.f32.mrb[7].mxu0 }
 0x521   : > { %v535_v30 = vpop.f32.mrb[8].mxu0 }
 0x522   : > { %657 = vrot.lane.b32.xlu0 %v535_v30, %s885_s5  ;;  %v817_v31 = vpop.f32.mrb[9].mxu0 }
 0x523   : > { %v538_v32 = vpop.f32.mrb[10].mxu0 }
 0x524   : > { %v818_v33 = vpop.f32.mrb[11].mxu0 }
 0x529   : > { %v646_v35 = vpop.f32.mrb[12].mxu0 }
 0x52a   : > { %661 = vrot.lane.b32.xlu1 %v646_v35, %s886_s6  ;;  %v829_v0 = vpop.f32.mrb[13].mxu0 }
 0x52b   : > { %v649_v36 = vpop.f32.mrb[14].mxu0 }
 0x52c   : > { %v830_v37 = vpop.f32.mrb[15].mxu0 }
 0x58b   : > { %v654_v38 = vpop.permute.xlu1 %653 }
 0x58c   : > { %v664_v40 = vsel %vm207_vm1, %v971_v34, %v654_v38 }
 0x594   : > { %v658_v39 = vpop.permute.xlu0 %657 }
 0x595   : > { %v666_v41 = vsel %vm665_vm4, %v664_v40, %v658_v39 }
 0x59c   : > { %v662_v42 = vpop.permute.xlu1 %661 }
 0x59d   : > { %v668_v43 = vsel %vm667_vm5, %v666_v41, %v662_v42 }
 0x59e   : > { %670 = vst.msk [vmem:[%s199_s9] sm:$0xff] %vm669_vm6, %v668_v43 }
 0x59f PF: > { %s13_s12 = sadd.s32 1, %s873_s12  }
 0x5a0   : > { %p10_p4 = scmp.ge.s32.totalorder %s13_s12, 4  }
 0x5a2   :  { %12 = sbr.rel (!%p10_p4) target bundleno = 1 (0x1), region = 68 }

// kernel: forward.32
= control target key start
LH: loop header
LB: loop body
LE: loop exit
PB: predicated region body
PF: predicated region fallthrough
CT: control target
= control target key end

     0   :  { %v161_v0 = vmov 0.0   ;;  %vm162_vm0 = vmmov 0   ;;  %vm40_vm1 = vcmask 261120   ;;  %s244_s1 = inlined_call_operand.vmem [shape: f32[32,32], index: 1, kind: input, shape index: {}]   ;;  %s245_s0 = inlined_call_operand.vmem [shape: f32[16,32], index: 0, kind: input, shape index: {}]   ;;  %s246_s2 = inlined_call_operand.vmem [shape: f32[1,32], index: 2, kind: input, shape index: {}]   ;;  %s247_s3 = inlined_call_operand.vmem [shape: f32[16,32], index: 3, kind: input, shape index: {}]   ;;  %s248_s4 = inlined_call_operand.vmem [shape: f32[1,32], index: 4, kind: input, shape index: {}]   ;;  %s249_s5 = inlined_call_operand.vmem [shape: f32[1,32], index: 5, kind: input, shape index: {}]   ;;  %s250_s6 = inlined_call_operand.vmem [shape: f32[16,32], index: 6, kind: output, shape index: {}]  }
   0x1   :  { %147 = vmatprep.subr.bf16.mxu0 %v161_v0  ;;  %v27_v1 = vld [vmem:[%s244_s1] sm:$0xff]  ;;  %v28_v2 = vld [vmem:[%s244_s1 + $0x8] sm:$0xff]  ;;  %v29_v3 = vld [vmem:[%s244_s1 + $0x10] sm:$0xff]  ;;  %151 = vmatprep.mubr.msk.bf16.mxu0 %vm162_vm0, %v161_v0 }
   0x2   :  { %v31_v4 = vpack.c.bf16 %v28_v2, %v27_v1  ;;  %v30_v5 = vld [vmem:[%s244_s1 + $0x18] sm:$0xff]  ;;  %v24_v7 = vld [vmem:[%s245_s0] sm:$0xff]  ;;  %v25_v8 = vld [vmem:[%s245_s0 + $0x8] sm:$0xff] }
   0x3   :  { %v32_v6 = vpack.c.bf16 %v30_v5, %v29_v3  ;;  %v26_v9 = vpack.c.bf16 %v25_v8, %v24_v7  ;;  %v140_v10 = vld [vmem:[%s246_s2] ss:$0 sm:$0xff]  ;;  %v86_v16 = vld [vmem:[%s247_s3 + $0x8] sm:$0xff] }
   0x4   :  { %148 = vmatpush3.bf16.msra.mxu0 %v31_v4  ;;  %v85_v12 = vld [vmem:[%s247_s3] sm:$0xff] }
   0x5   :  { %149 = vmatprep.subr.bf16.mxu0 %v161_v0  ;;  %v142_v40 = vld [vmem:[%s248_s4] ss:$0 sm:$0xff] }
   0x6   :  { %v143_v42 = vld [vmem:[%s249_s5] ss:$0 sm:$0xff] }
   0x8   :  { %150 = vmatpush3.bf16.msra.mxu0 %v32_v6 }
   0xb   :  { %152 = vmatmul.mubr.msk.bf16.vlgmr.msra.gmra.mrb[0].mxu0 %vm40_vm1, %v26_v9 }
  0xde   :  { %v78_v11 = vpop.f32.mrb[0].mxu0 }
  0xdf   :  { %v79_v13 = vadd.f32 %v140_v10, %v78_v11  ;;  %v153_v14 = vpop.f32.mrb[1].mxu0 }
  0xe0   :  { %v81_v15 = vpop.f32.mrb[2].mxu0 }
  0xe1   :  { %v82_v17 = vadd.f32 %v140_v10, %v81_v15  ;;  %v154_v18 = vpop.f32.mrb[3].mxu0  ;;  %v87_v19 = vadd.f32 %v85_v12, %v79_v13 }
  0xe3   :  { %v89_v20 = vsel %vm40_vm1, %v87_v19, 0.0  ;;  %v88_v21 = vadd.f32 %v86_v16, %v82_v17 }
  0xe4   :  { %90 = vadd.xlane.f32.xlu0 %v89_v20 }
  0xe5   :  { %v92_v22 = vsel %vm40_vm1, %v88_v21, 0.0 }
  0xe8   :  { %93 = vadd.xlane.f32.xlu0 %v92_v22 }
 0x171   :  { %v91_v23 = vpop.xlane.xlu0 %90 }
 0x172   :  { %v96_v24 = vmul.f32 0.03125, %v91_v23 }
 0x174   :  { %v98_v25 = vsub.f32 %v87_v19, %v96_v24 }
 0x175   :  { %v94_v26 = vpop.xlane.xlu0 %93 }
 0x176   :  { %v97_v27 = vmul.f32 0.03125, %v94_v26  ;;  %v100_v28 = vmul.f32 %v98_v25, %v98_v25 }
 0x178   :  { %v99_v29 = vsub.f32 %v88_v21, %v97_v27  ;;  %v102_v30 = vsel %vm40_vm1, %v100_v28, 0.0 }
 0x179   :  { %103 = vadd.xlane.f32.xlu1 %v102_v30 }
 0x17a   :  { %v101_v31 = vmul.f32 %v99_v29, %v99_v29 }
 0x17c   :  { %v105_v32 = vsel %vm40_vm1, %v101_v31, 0.0 }
 0x17d   :  { %106 = vadd.xlane.f32.xlu1 %v105_v32 }
 0x206   :  { %v104_v33 = vpop.xlane.xlu1 %103 }
 0x207   :  { %v108_v34 = vmul.f32 0.03125, %v104_v33 }
 0x209   :  { %v110_v35 = vadd.f32 1e-05, %v108_v34 }
 0x20a   :  { %v107_v36 = vpop.xlane.xlu1 %106 }
 0x20b   :  { %157 = vrsqrt.f32 %v110_v35  ;;  %v109_v37 = vmul.f32 0.03125, %v107_v36 }
 0x20d   :  { %v111_v38 = vadd.f32 1e-05, %v109_v37 }
 0x20f   :  { %159 = vrsqrt.f32 %v111_v38 }
 0x215   :  { %v158_v39 = vpop.eup %157 }
 0x216   :  { %v114_v41 = vmul.f32 %v158_v39, %v98_v25 }
 0x218   :  { %v123_v43 = vmul.f32 %v142_v40, %v114_v41 }
 0x219   :  { %v160_v44 = vpop.eup %159 }
 0x21a   :  { %v132_v45 = vadd.f32 %v143_v42, %v123_v43  ;;  %v115_v46 = vmul.f32 %v160_v44, %v99_v29 }
 0x21c   :  { %134 = vst.msk [vmem:[%s250_s6] sm:$0xff] %vm40_vm1, %v132_v45  ;;  %v124_v47 = vmul.f32 %v142_v40, %v115_v46 }
 0x21e   :  { %v133_v48 = vadd.f32 %v143_v42, %v124_v47 }
 0x220   :  { %135 = vst.msk [vmem:[%s250_s6 + $0x8] sm:$0xff] %vm40_vm1, %v133_v48 }

// kernel: forward.57
= control target key start
LH: loop header
LB: loop body
LE: loop exit
PB: predicated region body
PF: predicated region fallthrough
CT: control target
= control target key end

     0   :  { %v158_v3 = vmov 0.0   ;;  %vm159_vm0 = vmmov 0   ;;  %vm20_vm1 = vcmask 408576   ;;  %s222_s0 = inlined_call_operand.vmem [shape: f32[16,32], index: 0, kind: input, shape index: {}]   ;;  %s223_s1 = inlined_call_operand.vmem [shape: f32[32,50], index: 1, kind: input, shape index: {}]   ;;  %s224_s2 = inlined_call_operand.vmem [shape: f32[1,50], index: 2, kind: input, shape index: {}]   ;;  %s225_s3 = inlined_call_operand.hbm [shape: f32[16,50], index: 3, kind: output, shape index: {}]  }
   0x1   :  { %v28_v0 = vld [vmem:[%s223_s1] sm:$0xff]  ;;  %v29_v1 = vld [vmem:[%s223_s1 + $0x8] sm:$0xff]  ;;  %v30_v2 = vld [vmem:[%s223_s1 + $0x10] sm:$0xff]  ;;  %121 = vmatprep.subr.bf16.mxu0 %v158_v3  ;;  %125 = vmatprep.mubr.msk.bf16.mxu0 %vm159_vm0, %v158_v3  ;;  %21 = vst.msk [vmem:[#allocation2] sm:$0xff] %vm20_vm1, %v158_v3 }
   0x2   :  { %v32_v4 = vpack.c.bf16 %v29_v1, %v28_v0  ;;  %v31_v5 = vld [vmem:[%s223_s1 + $0x18] sm:$0xff]  ;;  %22 = vst.msk [vmem:[#allocation2 + $0x8] sm:$0xff] %vm20_vm1, %v158_v3 }
   0x3   :  { %8 = vsyncpa [#allocation4], 0  ;;  %v33_v6 = vpack.c.bf16 %v31_v5, %v30_v2  ;;  %v25_v7 = vld [vmem:[%s222_s0] sm:$0xff]  ;;  %v26_v8 = vld [vmem:[%s222_s0 + $0x8] sm:$0xff]  ;;  %vm34_vm2 = vcmask 261120   ;;  %s160_s0 = smov [#allocation3]  }
   0x4   :  { %122 = vmatpush3.bf16.msra.mxu0 %v32_v4  ;;  %v27_v9 = vpack.c.bf16 %v26_v8, %v25_v7  ;;  %v117_v18 = vld [vmem:[%s224_s2] ss:$0 sm:$0xff]  ;;  %s105_s25 = sshll.u32 %s160_s0, 4  ;;  %s106_s25 = int_to_ptr.vmem [resolvable:$true] %s105_s25 }
   0x5   :  { %123 = vmatprep.subr.bf16.mxu0 %v158_v3  ;;  %s134_s26 = scalar_lea.vmem %s106_s25, 256  ;;  %p139_p1 = scmp.lt.s32.totalorder %s106_s25, %s106_s25 }
   0x6   :  { %p135_p0 = scmp.ne.s32.totalorder %s106_s25, %s134_s26  ;;  %p140_p2 = scmp.lt.s32.totalorder %s134_s26, %s134_s26 }
   0x8   :  { %124 = vmatpush3.bf16.msra.mxu0 %v33_v6  ;;  %v23_v10 = vld [vmem:[#allocation2] sm:$0xff]  ;;  %p141_p3 = por %p140_p2, %p139_p1 }
   0x9   :  { %v24_v12 = vld [vmem:[#allocation2 + $0x8] sm:$0xff] }
   0xa   :  { %p142_p4 = pnand %p141_p3, %p135_p0 }
   0xb   :  { %126 = vmatmul.mubr.msk.bf16.vlgmr.msra.gmra.mrb[0].mxu0 %vm34_vm2, %v27_v9 }
  0xde   :  { %v72_v11 = vpop.f32.mrb[0].mxu0 }
  0xdf   :  { %v79_v13 = vadd.f32 %v72_v11, %v23_v10  ;;  %v127_v14 = vpop.f32.mrb[1].mxu0 }
  0xe0   :  { %v75_v15 = vpop.f32.mrb[2].mxu0 }
  0xe1   :  { %82 = vst.msk [vmem:[#allocation2] sm:$0xff] %vm20_vm1, %v79_v13  ;;  %v80_v16 = vadd.f32 %v75_v15, %v24_v12  ;;  %v128_v17 = vpop.f32.mrb[3].mxu0 }
  0xe3   :  { %83 = vst.msk [vmem:[#allocation2 + $0x8] sm:$0xff] %vm20_vm1, %v80_v16 }
  0xe8   :  { %v87_v19 = vld [vmem:[#allocation2] sm:$0xff] }
  0xe9   :  { %v96_v20 = vadd.f32 %v117_v18, %v87_v19 }
  0xea   :  { %v88_v21 = vld [vmem:[#allocation2 + $0x8] sm:$0xff] }
  0xeb   :  { %v97_v22 = vadd.f32 %v117_v18, %v88_v21  ;;  %98 = vst.msk [vmem:[#allocation3] sm:$0xff] %vm20_vm1, %v96_v20 }
  0xed   :  { %99 = vst.msk [vmem:[#allocation3 + $0x8] sm:$0xff] %vm20_vm1, %v97_v22 }
  0xee   :  { %145 = shalt.err (!%p142_p4)
}
  0xef   :  { %s146_s28 = scalar_lea.hbm %s225_s3, 256 }
  0xf0   :  { %p147_p5 = scmp.ne.s32.totalorder %s225_s3, %s146_s28  ;;  %p150_p6 = scmp.lt.u32.totalorder %s146_s28, %s225_s3 }
  0xf2   :  { %p152_p7 = pnand %p150_p6, %p147_p5 }
  0xf4   :  { %155 = shalt.err (!%p152_p7)
}
  0xf5   :  { %s161_s6 = smov 128   ;;  %s162_s7 = smov 8  }
  0xf6   :  { %111 = dma.vmem_to_hbm [thread:$0]  %s106_s25, 256, %s225_s3, [#allocation4], %s161_s6, %s161_s6, %s162_s7  }
  0xf7   :  { %156 = dma.done.wait [#allocation4], 256  }
  0xf8   :  { %157 = vsyncadd [#allocation4], 4294967040 }
  0xf9   :  { %115 = vsyncpa [#allocation4], 1 }

// kernel: forward.33
= control target key start
LH: loop header
LB: loop body
LE: loop exit
PB: predicated region body
PF: predicated region fallthrough
CT: control target
= control target key end

     0   :  { %v248_v0 = vmov 0.0   ;;  %vm249_vm0 = vmmov 0   ;;  %vm43_vm1 = vcmask 261120   ;;  %vm110_vm2 = vcmask 523264   ;;  %s357_s1 = inlined_call_operand.vmem [shape: f32[32,64], index: 1, kind: input, shape index: {}]   ;;  %s358_s3 = inlined_call_operand.vmem [shape: f32[64,32], index: 3, kind: input, shape index: {}]   ;;  %s359_s0 = inlined_call_operand.vmem [shape: f32[16,32], index: 0, kind: input, shape index: {}]   ;;  %s360_s2 = inlined_call_operand.vmem [shape: f32[1,64], index: 2, kind: input, shape index: {}]   ;;  %s361_s4 = inlined_call_operand.vmem [shape: f32[1,32], index: 4, kind: input, shape index: {}]   ;;  %s362_s5 = inlined_call_operand.vmem [shape: f32[1,32], index: 5, kind: input, shape index: {}]   ;;  %s363_s6 = inlined_call_operand.vmem [shape: f32[1,32], index: 6, kind: input, shape index: {}]   ;;  %s364_s7 = inlined_call_operand.vmem [shape: f32[16,32], index: 7, kind: output, shape index: {}]  }
   0x1   :  { %222 = vmatprep.subr.bf16.mxu0 %v248_v0  ;;  %v30_v1 = vld [vmem:[%s357_s1] sm:$0xff]  ;;  %v31_v2 = vld [vmem:[%s357_s1 + $0x8] sm:$0xff]  ;;  %v32_v3 = vld [vmem:[%s357_s1 + $0x10] sm:$0xff]  ;;  %226 = vmatprep.mubr.msk.bf16.mxu0 %vm249_vm0, %v248_v0 }
   0x2   :  { %v34_v4 = vpack.c.bf16 %v31_v2, %v30_v1  ;;  %v33_v5 = vld [vmem:[%s357_s1 + $0x18] sm:$0xff]  ;;  %230 = vmatprep.subr.bf16.mxu1 %v248_v0  ;;  %238 = vmatprep.mubr.msk.bf16.mxu1 %vm249_vm0, %v248_v0  ;;  %v91_v6 = vld [vmem:[%s358_s3] sm:$0xff]  ;;  %v92_v7 = vld [vmem:[%s358_s3 + $0x8] sm:$0xff] }
   0x3   :  { %v93_v8 = vld [vmem:[%s358_s3 + $0x10] sm:$0xff]  ;;  %v35_v9 = vpack.c.bf16 %v33_v5, %v32_v3  ;;  %v27_v10 = vld [vmem:[%s359_s0] sm:$0xff]  ;;  %v28_v11 = vld [vmem:[%s359_s0 + $0x8] sm:$0xff]  ;;  %v99_v12 = vpack.c.bf16 %v92_v7, %v91_v6 }
   0x4   :  { %223 = vmatpush3.bf16.msra.mxu0 %v34_v4  ;;  %v94_v13 = vld [vmem:[%s358_s3 + $0x18] sm:$0xff]  ;;  %v29_v15 = vpack.c.bf16 %v28_v11, %v27_v10  ;;  %v95_v16 = vld [vmem:[%s358_s3 + $0x20] sm:$0xff]  ;;  %v96_v17 = vld [vmem:[%s358_s3 + $0x28] sm:$0xff] }
   0x5   :  { %224 = vmatprep.subr.bf16.mxu0 %v248_v0  ;;  %231 = vmatpush3.bf16.msra.mxu1 %v99_v12  ;;  %v100_v14 = vpack.c.bf16 %v94_v13, %v93_v8  ;;  %v101_v18 = vpack.c.bf16 %v96_v17, %v95_v16  ;;  %v97_v19 = vld [vmem:[%s358_s3 + $0x30] sm:$0xff]  ;;  %v98_v20 = vld [vmem:[%s358_s3 + $0x38] sm:$0xff]  ;;  %v208_v22 = vld [vmem:[%s360_s2] ss:$0 sm:$0xff] }
   0x6   :  { %232 = vmatprep.subr.bf16.mxu1 %v248_v0  ;;  %v102_v21 = vpack.c.bf16 %v98_v20, %v97_v19  ;;  %v210_v32 = vld [vmem:[%s361_s4] ss:$0 sm:$0xff] }
   0x7   :  { %v212_v60 = vld [vmem:[%s362_s5] ss:$0 sm:$0xff] }
   0x8   :  { %225 = vmatpush3.bf16.msra.mxu0 %v35_v9  ;;  %v213_v62 = vld [vmem:[%s363_s6] ss:$0 sm:$0xff] }
   0x9   :  { %233 = vmatpush3.bf16.msra.mxu1 %v100_v14 }
   0xa   :  { %234 = vmatprep.subr.bf16.mxu1 %v248_v0 }
   0xb   :  { %227 = vmatmul.mubr.msk.bf16.vlgmr.msra.gmra.mrb[0].mxu0 %vm43_vm1, %v29_v15 }
   0xd   :  { %235 = vmatpush3.bf16.msra.mxu1 %v101_v18 }
   0xe   :  { %236 = vmatprep.subr.bf16.mxu1 %v248_v0 }
  0x11   :  { %237 = vmatpush3.bf16.msra.mxu1 %v102_v21 }
  0xde   :  { %v81_v23 = vpop.f32.mrb[0].mxu0 }
  0xdf   :  { %v82_v24 = vadd.f32 %v208_v22, %v81_v23  ;;  %v228_v25 = vpop.f32.mrb[1].mxu0 }
  0xe0   :  { %v84_v26 = vpop.f32.mrb[2].mxu0 }
  0xe1   :  { %v85_v27 = vadd.f32 %v208_v22, %v84_v26  ;;  %v229_v28 = vpop.f32.mrb[3].mxu0  ;;  %v88_v29 = vmax.f32 %v82_v24, 0.0 }
  0xe3   :  { %v89_v30 = vmax.f32 %v85_v27, 0.0 }
  0xe5   :  { %v90_v31 = vpack.c.bf16 %v89_v30, %v88_v29 }
  0xe7   :  { %239 = vmatmul.mubr.msk.bf16.vlgmr.msra.gmra.mrb[0].mxu1 %vm110_vm2, %v90_v31 }
 0x1ba   :  { %v148_v33 = vpop.f32.mrb[0].mxu1 }
 0x1bb   :  { %v149_v34 = vadd.f32 %v210_v32, %v148_v33  ;;  %v240_v35 = vpop.f32.mrb[1].mxu1 }
 0x1bc   :  { %v151_v36 = vpop.f32.mrb[2].mxu1 }
 0x1bd   :  { %v152_v37 = vadd.f32 %v210_v32, %v151_v36  ;;  %v241_v38 = vpop.f32.mrb[3].mxu1  ;;  %v155_v39 = vadd.f32 %v149_v34, %v27_v10 }
 0x1bf   :  { %v157_v40 = vsel %vm43_vm1, %v155_v39, 0.0  ;;  %v156_v41 = vadd.f32 %v152_v37, %v28_v11 }
 0x1c0   :  { %158 = vadd.xlane.f32.xlu0 %v157_v40 }
 0x1c1   :  { %v160_v42 = vsel %vm43_vm1, %v156_v41, 0.0 }
 0x1c4   :  { %161 = vadd.xlane.f32.xlu0 %v160_v42 }
 0x24d   :  { %v159_v43 = vpop.xlane.xlu0 %158 }
 0x24e   :  { %v164_v44 = vmul.f32 0.03125, %v159_v43 }
 0x250   :  { %v166_v45 = vsub.f32 %v155_v39, %v164_v44 }
 0x251   :  { %v162_v46 = vpop.xlane.xlu0 %161 }
 0x252   :  { %v165_v47 = vmul.f32 0.03125, %v162_v46  ;;  %v168_v48 = vmul.f32 %v166_v45, %v166_v45 }
 0x254   :  { %v167_v49 = vsub.f32 %v156_v41, %v165_v47  ;;  %v170_v50 = vsel %vm43_vm1, %v168_v48, 0.0 }
 0x255   :  { %171 = vadd.xlane.f32.xlu1 %v170_v50 }
 0x256   :  { %v169_v51 = vmul.f32 %v167_v49, %v167_v49 }
 0x258   :  { %v173_v52 = vsel %vm43_vm1, %v169_v51, 0.0 }
 0x259   :  { %174 = vadd.xlane.f32.xlu1 %v173_v52 }
 0x2e2   :  { %v172_v53 = vpop.xlane.xlu1 %171 }
 0x2e3   :  { %v176_v54 = vmul.f32 0.03125, %v172_v53 }
 0x2e5   :  { %v178_v55 = vadd.f32 1e-05, %v176_v54 }
 0x2e6   :  { %v175_v56 = vpop.xlane.xlu1 %174 }
 0x2e7   :  { %244 = vrsqrt.f32 %v178_v55  ;;  %v177_v57 = vmul.f32 0.03125, %v175_v56 }
 0x2e9   :  { %v179_v58 = vadd.f32 1e-05, %v177_v57 }
 0x2eb   :  { %246 = vrsqrt.f32 %v179_v58 }
 0x2f1   :  { %v245_v59 = vpop.eup %244 }
 0x2f2   :  { %v182_v61 = vmul.f32 %v245_v59, %v166_v45 }
 0x2f4   :  { %v191_v63 = vmul.f32 %v212_v60, %v182_v61 }
 0x2f5   :  { %v247_v0 = vpop.eup %246 }
 0x2f6   :  { %v200_v1 = vadd.f32 %v213_v62, %v191_v63  ;;  %v183_v2 = vmul.f32 %v247_v0, %v167_v49 }
 0x2f8   :  { %202 = vst.msk [vmem:[%s364_s7] sm:$0xff] %vm43_vm1, %v200_v1  ;;  %v192_v3 = vmul.f32 %v212_v60, %v183_v2 }
 0x2fa   :  { %v201_v4 = vadd.f32 %v213_v62, %v192_v3 }
 0x2fc   :  { %203 = vst.msk [vmem:[%s364_s7 + $0x8] sm:$0xff] %vm43_vm1, %v201_v4 }

</bundles_post_ra>
